<compile_context>
chip_gen: v7x
topology: tpu7x:2x2x1
jax: 0.10.0
libtpu: 0.0.40
codegen_flags: <defaults>
</compile_context>

<pallas_src>
import jax
import jax.numpy as jnp
from jax import lax
from jax.experimental import pallas as pl
from jax.experimental.pallas import tpu as pltpu

EPS = 1e-5
K = 3  # depthwise kernel size (stride=1, padding=1)


def _decomposed_conv_kernel(x_ref, wdw_ref, wpw_ref, bpw_ref, o_ref):
    """One grid step = `B` images.

    x_ref   : (B, Cin, H, W)  VMEM   NCHW input block (H on sublanes, W on lanes)
    wdw_ref : (Cin, K*K)      SMEM   depthwise weights (per-channel scalars)
    wpw_ref : (Cout, Cin)     SMEM   pointwise weights (scalars)
    bpw_ref : (Cout,)         SMEM   pointwise bias (scalars)
    o_ref   : (B, Cout, H, W) VMEM   NCHW output block
    """
    B, Cin, H, W = x_ref.shape
    Cout = o_ref.shape[1]
    inv_hw = 1.0 / float(H * W)

    # Border-validity masks for the 3x3 taps (hoisted: JAX does not CSE these).
    row = lax.broadcasted_iota(jnp.int32, (H, W), 0)
    col = lax.broadcasted_iota(jnp.int32, (H, W), 1)
    keep_up, keep_down = row >= 1, row < (H - 1)      # dh = -1 / +1
    keep_left, keep_right = col >= 1, col < (W - 1)   # dw = -1 / +1

    def _tap_mask(dh, dw):
        m = None
        if dh == 1:
            m = keep_down
        elif dh == -1:
            m = keep_up
        if dw == 1:
            m = keep_right if m is None else (m & keep_right)
        elif dw == -1:
            m = keep_left if m is None else (m & keep_left)
        return m

    masks = {(dh, dw): _tap_mask(dh, dw) for dh in (-1, 0, 1) for dw in (-1, 0, 1)}

    for b in range(B):
        # ---- depthwise 3x3 + InstanceNorm (two-pass, f32) per channel -------
        scaled = []
        for ci in range(Cin):
            xc = x_ref[b, ci].astype(jnp.float32)          # (H, W) tile, f32 acc
            a = jnp.zeros((H, W), jnp.float32)
            for dh in (-1, 0, 1):
                # shifted[h, w] = x[h+dh, w+dw] (zero outside) via XLU roll + mask
                xs = xc if dh == 0 else pltpu.roll(xc, shift=(-dh) % H, axis=0)
                for dw in (-1, 0, 1):
                    xss = xs if dw == 0 else pltpu.roll(xs, shift=(-dw) % W, axis=1)
                    m = masks[(dh, dw)]
                    if m is not None:
                        xss = jnp.where(m, xss, 0.0)
                    a = a + xss * wdw_ref[ci, (dh + 1) * K + (dw + 1)]
            # NOTE: depthwise bias intentionally omitted -- a per-channel constant
            # is exactly cancelled by the non-affine InstanceNorm below.

            # InstanceNorm2d statistics: center first (in f32), then variance.
            mean = jnp.sum(jnp.sum(a, axis=1, keepdims=True),
                           axis=0, keepdims=True) * inv_hw
            centered = a - mean
            var = jnp.sum(jnp.sum(centered * centered, axis=1, keepdims=True),
                          axis=0, keepdims=True) * inv_hw
            scaled.append(centered * lax.rsqrt(var + EPS))  # inv_std folded here

        # ---- pointwise 1x1 conv: Cout x Cin scalar MACs on the VPU ----------
        for co in range(Cout):
            o = scaled[0] * wpw_ref[co, 0]
            for ci in range(1, Cin):
                o = o + scaled[ci] * wpw_ref[co, ci]
            o_ref[b, co] = (o + bpw_ref[co]).astype(o_ref.dtype)


def _vmem_limit_bytes():
    # Derive per-generation; cap well below v7x's 64 MiB physical VMEM.
    try:
        cap = int(pltpu.get_tpu_info().vmem_capacity_bytes)
    except Exception:  # pragma: no cover - conservative fallback
        cap = 64 * 1024 * 1024
    return min(cap // 2, 40 * 1024 * 1024)


@jax.jit
def decomposed_conv2d(x, w_dw, b_dw, w_pw, b_pw):
    """NCHW in / NCHW out, matching the PyTorch module.

    x    : (N, Cin, H, W)
    w_dw : (Cin, 1, K, K)   depthwise weight
    b_dw : (Cin,)           depthwise bias (dead under non-affine InstanceNorm;
                            accepted for API parity)
    w_pw : (Cout, Cin, 1, 1) pointwise weight
    b_pw : (Cout,)           pointwise bias
    """
    del b_dw  # exactly cancelled by InstanceNorm (no affine)
    N, Cin, H, W = x.shape
    Cout = w_pw.shape[0]

    # One image per grid step -> >= 2 "parallel" steps for v7x's 2 TensorCores.
    # (Raise to amortize the ~0.35us/step overhead when H*W is tiny and N large.)
    images_per_step = 1
    assert N % images_per_step == 0

    # Tiny weight repacks only (no activation transposes/reshapes in the wrapper).
    wdw = w_dw.reshape(Cin, K * K).astype(jnp.float32)   # (Cin, 9)    -> SMEM
    wpw = w_pw.reshape(Cout, Cin).astype(jnp.float32)    # (Cout, Cin) -> SMEM
    bpw = b_pw.astype(jnp.float32)                       # (Cout,)     -> SMEM

    return pl.pallas_call(
        _decomposed_conv_kernel,
        out_shape=jax.ShapeDtypeStruct((N, Cout, H, W), x.dtype),
        grid=(N // images_per_step,),
        in_specs=[
            pl.BlockSpec((images_per_step, Cin, H, W), lambda n: (n, 0, 0, 0)),
            pl.BlockSpec(memory_space=pltpu.MemorySpace.SMEM),
            pl.BlockSpec(memory_space=pltpu.MemorySpace.SMEM),
            pl.BlockSpec(memory_space=pltpu.MemorySpace.SMEM),
        ],
        out_specs=pl.BlockSpec((images_per_step, Cout, H, W),
                               lambda n: (n, 0, 0, 0)),
        compiler_params=pltpu.CompilerParams(
            dimension_semantics=("parallel",),
            vmem_limit_bytes=_vmem_limit_bytes(),
        ),
    )(x, wdw, wpw, bpw)


def _reference(x, w_dw, b_dw, w_pw, b_pw):
    """Pure-JAX reference (NCHW), mirrors the PyTorch module exactly (incl. bias)."""
    Cin = x.shape[1]
    y = lax.conv_general_dilated(
        x, w_dw, window_strides=(1, 1), padding=((1, 1), (1, 1)),
        dimension_numbers=("NCHW", "OIHW", "NCHW"),
        feature_group_count=Cin)
    y = y + b_dw.reshape(1, -1, 1, 1)
    mean = jnp.mean(y, axis=(2, 3), keepdims=True)
    var = jnp.mean((y - mean) ** 2, axis=(2, 3), keepdims=True)
    y = (y - mean) / jnp.sqrt(var + EPS)
    z = lax.conv_general_dilated(
        y, w_pw, window_strides=(1, 1), padding="VALID",
        dimension_numbers=("NCHW", "OIHW", "NCHW"))
    return z + b_pw.reshape(1, -1, 1, 1)


if __name__ == "__main__":
    N, Cin, Cout, H, W = 2, 4, 8, 16, 16

    key = jax.random.PRNGKey(0)
    kx, k1, k2, k3, k4 = jax.random.split(key, 5)

    x = jax.random.normal(kx, (N, Cin, H, W), dtype=jnp.float32)
    w_dw = jax.random.normal(k1, (Cin, 1, K, K), dtype=jnp.float32) * 0.3
    b_dw = jax.random.normal(k2, (Cin,), dtype=jnp.float32) * 0.1
    w_pw = jax.random.normal(k3, (Cout, Cin, 1, 1), dtype=jnp.float32) * 0.3
    b_pw = jax.random.normal(k4, (Cout,), dtype=jnp.float32) * 0.1

    out = jax.block_until_ready(decomposed_conv2d(x, w_dw, b_dw, w_pw, b_pw))
    ref = jax.block_until_ready(_reference(x, w_dw, b_dw, w_pw, b_pw))

    assert out.shape == (N, Cout, H, W)
    assert jnp.allclose(out, ref, atol=1e-4, rtol=1e-4), (
        f"max abs err = {jnp.max(jnp.abs(out - ref))}")

    print("KERNEL_OK")
</pallas_src>

<mosaic_0001>
module attributes {stable_mosaic.version = 11 : i64} {
  func.func @_decomposed_conv_kernel(%arg0: i32, %arg1: memref<1x4x16x16xf32, #tpu.memory_space<vmem>>, %arg2: memref<4x9xf32, #tpu.memory_space<smem>>, %arg3: memref<8x4xf32, #tpu.memory_space<smem>>, %arg4: memref<8xf32, #tpu.memory_space<smem>>, %arg5: memref<1x8x16x16xf32, #tpu.memory_space<vmem>>) attributes {dimension_semantics = [#tpu.dimension_semantics<parallel>], iteration_bounds = array<i64: 2>, scalar_prefetch = 0 : i64, scratch_operands = 0 : i64, tpu.core_type = #tpu.core_type<tc>, window_params = [{transform_indices = @transform_0, window_bounds = array<i64: 1, 4, 16, 16>}, {transform_indices = @transform_1, window_bounds = array<i64: 4, 9>}, {transform_indices = @transform_2, window_bounds = array<i64: 8, 4>}, {transform_indices = @transform_3, window_bounds = array<i64: 8>}, {transform_indices = @transform_4, window_bounds = array<i64: 1, 8, 16, 16>}]} {
    %0 = tpu.iota {dimensions = array<i32: 0>} : vector<16x16xi32>
    %1 = tpu.iota {dimensions = array<i32: 1>} : vector<16x16xi32>
    %c1_i32 = arith.constant 1 : i32
    %2 = vector.broadcast %c1_i32 : i32 to vector<16x16xi32>
    %3 = arith.cmpi sge, %0, %2 : vector<16x16xi32>
    %c15_i32 = arith.constant 15 : i32
    %4 = vector.broadcast %c15_i32 : i32 to vector<16x16xi32>
    %5 = arith.cmpi slt, %0, %4 : vector<16x16xi32>
    %c1_i32_0 = arith.constant 1 : i32
    %6 = vector.broadcast %c1_i32_0 : i32 to vector<16x16xi32>
    %7 = arith.cmpi sge, %1, %6 : vector<16x16xi32>
    %c15_i32_1 = arith.constant 15 : i32
    %8 = vector.broadcast %c15_i32_1 : i32 to vector<16x16xi32>
    %9 = arith.cmpi slt, %1, %8 : vector<16x16xi32>
    %10 = arith.andi %3, %7 : vector<16x16xi1>
    %11 = arith.andi %3, %9 : vector<16x16xi1>
    %12 = arith.andi %5, %7 : vector<16x16xi1>
    %13 = arith.andi %5, %9 : vector<16x16xi1>
    %c0 = arith.constant 0 : index
    %c0_2 = arith.constant 0 : index
    %c0_3 = arith.constant 0 : index
    %c0_4 = arith.constant 0 : index
    %14 = vector.load %arg1[%c0, %c0_2, %c0_3, %c0_4] : memref<1x4x16x16xf32, #tpu.memory_space<vmem>>, vector<1x1x16x16xf32>
    %15 = vector.shape_cast %14 : vector<1x1x16x16xf32> to vector<16x16xf32>
    %cst = arith.constant 0.000000e+00 : f32
    %16 = vector.broadcast %cst : f32 to vector<16x16xf32>
    %c1_i32_5 = arith.constant 1 : i32
    %17 = tpu.dynamic_rotate %15 by %c1_i32_5 dim 0 : vector<16x16xf32>, i32 -> vector<16x16xf32>
    %c1_i32_6 = arith.constant 1 : i32
    %18 = tpu.dynamic_rotate %17 by %c1_i32_6 dim 1 : vector<16x16xf32>, i32 -> vector<16x16xf32>
    %cst_7 = arith.constant 0.000000e+00 : f32
    %19 = vector.broadcast %cst_7 : f32 to vector<16x16xf32>
    %20 = arith.select %10, %18, %19 : vector<16x16xi1>, vector<16x16xf32>
    %c0_8 = arith.constant 0 : index
    %c0_9 = arith.constant 0 : index
    %21 = memref.load %arg2[%c0_8, %c0_9] : memref<4x9xf32, #tpu.memory_space<smem>>
    %22 = vector.broadcast %21 : f32 to vector<16x16xf32>
    %23 = arith.mulf %20, %22 : vector<16x16xf32>
    %24 = arith.addf %16, %23 : vector<16x16xf32>
    %cst_10 = arith.constant 0.000000e+00 : f32
    %25 = vector.broadcast %cst_10 : f32 to vector<16x16xf32>
    %26 = arith.select %3, %17, %25 : vector<16x16xi1>, vector<16x16xf32>
    %c0_11 = arith.constant 0 : index
    %c1 = arith.constant 1 : index
    %27 = memref.load %arg2[%c0_11, %c1] : memref<4x9xf32, #tpu.memory_space<smem>>
    %28 = vector.broadcast %27 : f32 to vector<16x16xf32>
    %29 = arith.mulf %26, %28 : vector<16x16xf32>
    %30 = arith.addf %24, %29 : vector<16x16xf32>
    %c15_i32_12 = arith.constant 15 : i32
    %31 = tpu.dynamic_rotate %17 by %c15_i32_12 dim 1 : vector<16x16xf32>, i32 -> vector<16x16xf32>
    %cst_13 = arith.constant 0.000000e+00 : f32
    %32 = vector.broadcast %cst_13 : f32 to vector<16x16xf32>
    %33 = arith.select %11, %31, %32 : vector<16x16xi1>, vector<16x16xf32>
    %c0_14 = arith.constant 0 : index
    %c2 = arith.constant 2 : index
    %34 = memref.load %arg2[%c0_14, %c2] : memref<4x9xf32, #tpu.memory_space<smem>>
    %35 = vector.broadcast %34 : f32 to vector<16x16xf32>
    %36 = arith.mulf %33, %35 : vector<16x16xf32>
    %37 = arith.addf %30, %36 : vector<16x16xf32>
    %c1_i32_15 = arith.constant 1 : i32
    %38 = tpu.dynamic_rotate %15 by %c1_i32_15 dim 1 : vector<16x16xf32>, i32 -> vector<16x16xf32>
    %cst_16 = arith.constant 0.000000e+00 : f32
    %39 = vector.broadcast %cst_16 : f32 to vector<16x16xf32>
    %40 = arith.select %7, %38, %39 : vector<16x16xi1>, vector<16x16xf32>
    %c0_17 = arith.constant 0 : index
    %c3 = arith.constant 3 : index
    %41 = memref.load %arg2[%c0_17, %c3] : memref<4x9xf32, #tpu.memory_space<smem>>
    %42 = vector.broadcast %41 : f32 to vector<16x16xf32>
    %43 = arith.mulf %40, %42 : vector<16x16xf32>
    %44 = arith.addf %37, %43 : vector<16x16xf32>
    %c0_18 = arith.constant 0 : index
    %c4 = arith.constant 4 : index
    %45 = memref.load %arg2[%c0_18, %c4] : memref<4x9xf32, #tpu.memory_space<smem>>
    %46 = vector.broadcast %45 : f32 to vector<16x16xf32>
    %47 = arith.mulf %15, %46 : vector<16x16xf32>
    %48 = arith.addf %44, %47 : vector<16x16xf32>
    %c15_i32_19 = arith.constant 15 : i32
    %49 = tpu.dynamic_rotate %15 by %c15_i32_19 dim 1 : vector<16x16xf32>, i32 -> vector<16x16xf32>
    %cst_20 = arith.constant 0.000000e+00 : f32
    %50 = vector.broadcast %cst_20 : f32 to vector<16x16xf32>
    %51 = arith.select %9, %49, %50 : vector<16x16xi1>, vector<16x16xf32>
    %c0_21 = arith.constant 0 : index
    %c5 = arith.constant 5 : index
    %52 = memref.load %arg2[%c0_21, %c5] : memref<4x9xf32, #tpu.memory_space<smem>>
    %53 = vector.broadcast %52 : f32 to vector<16x16xf32>
    %54 = arith.mulf %51, %53 : vector<16x16xf32>
    %55 = arith.addf %48, %54 : vector<16x16xf32>
    %c15_i32_22 = arith.constant 15 : i32
    %56 = tpu.dynamic_rotate %15 by %c15_i32_22 dim 0 : vector<16x16xf32>, i32 -> vector<16x16xf32>
    %c1_i32_23 = arith.constant 1 : i32
    %57 = tpu.dynamic_rotate %56 by %c1_i32_23 dim 1 : vector<16x16xf32>, i32 -> vector<16x16xf32>
    %cst_24 = arith.constant 0.000000e+00 : f32
    %58 = vector.broadcast %cst_24 : f32 to vector<16x16xf32>
    %59 = arith.select %12, %57, %58 : vector<16x16xi1>, vector<16x16xf32>
    %c0_25 = arith.constant 0 : index
    %c6 = arith.constant 6 : index
    %60 = memref.load %arg2[%c0_25, %c6] : memref<4x9xf32, #tpu.memory_space<smem>>
    %61 = vector.broadcast %60 : f32 to vector<16x16xf32>
    %62 = arith.mulf %59, %61 : vector<16x16xf32>
    %63 = arith.addf %55, %62 : vector<16x16xf32>
    %cst_26 = arith.constant 0.000000e+00 : f32
    %64 = vector.broadcast %cst_26 : f32 to vector<16x16xf32>
    %65 = arith.select %5, %56, %64 : vector<16x16xi1>, vector<16x16xf32>
    %c0_27 = arith.constant 0 : index
    %c7 = arith.constant 7 : index
    %66 = memref.load %arg2[%c0_27, %c7] : memref<4x9xf32, #tpu.memory_space<smem>>
    %67 = vector.broadcast %66 : f32 to vector<16x16xf32>
    %68 = arith.mulf %65, %67 : vector<16x16xf32>
    %69 = arith.addf %63, %68 : vector<16x16xf32>
    %c15_i32_28 = arith.constant 15 : i32
    %70 = tpu.dynamic_rotate %56 by %c15_i32_28 dim 1 : vector<16x16xf32>, i32 -> vector<16x16xf32>
    %cst_29 = arith.constant 0.000000e+00 : f32
    %71 = vector.broadcast %cst_29 : f32 to vector<16x16xf32>
    %72 = arith.select %13, %70, %71 : vector<16x16xi1>, vector<16x16xf32>
    %c0_30 = arith.constant 0 : index
    %c8 = arith.constant 8 : index
    %73 = memref.load %arg2[%c0_30, %c8] : memref<4x9xf32, #tpu.memory_space<smem>>
    %74 = vector.broadcast %73 : f32 to vector<16x16xf32>
    %75 = arith.mulf %72, %74 : vector<16x16xf32>
    %76 = arith.addf %69, %75 : vector<16x16xf32>
    %cst_31 = arith.constant dense<0.000000e+00> : vector<16xf32>
    %77 = vector.multi_reduction <add>, %76, %cst_31 [1] : vector<16x16xf32> to vector<16xf32>
    %78 = vector.shape_cast %77 : vector<16xf32> to vector<16x1xf32>
    %cst_32 = arith.constant dense<0.000000e+00> : vector<1xf32>
    %79 = vector.multi_reduction <add>, %78, %cst_32 [0] : vector<16x1xf32> to vector<1xf32>
    %80 = vector.shape_cast %79 : vector<1xf32> to vector<1x1xf32>
    %cst_33 = arith.constant 3.906250e-03 : f32
    %81 = vector.broadcast %cst_33 : f32 to vector<1x1xf32>
    %82 = arith.mulf %80, %81 : vector<1x1xf32>
    %83 = vector.broadcast %82 : vector<1x1xf32> to vector<16x16xf32>
    %84 = arith.subf %76, %83 : vector<16x16xf32>
    %85 = arith.mulf %84, %84 : vector<16x16xf32>
    %cst_34 = arith.constant dense<0.000000e+00> : vector<16xf32>
    %86 = vector.multi_reduction <add>, %85, %cst_34 [1] : vector<16x16xf32> to vector<16xf32>
    %87 = vector.shape_cast %86 : vector<16xf32> to vector<16x1xf32>
    %cst_35 = arith.constant dense<0.000000e+00> : vector<1xf32>
    %88 = vector.multi_reduction <add>, %87, %cst_35 [0] : vector<16x1xf32> to vector<1xf32>
    %89 = vector.shape_cast %88 : vector<1xf32> to vector<1x1xf32>
    %cst_36 = arith.constant 3.906250e-03 : f32
    %90 = vector.broadcast %cst_36 : f32 to vector<1x1xf32>
    %91 = arith.mulf %89, %90 : vector<1x1xf32>
    %cst_37 = arith.constant 9.99999974E-6 : f32
    %92 = vector.broadcast %cst_37 : f32 to vector<1x1xf32>
    %93 = arith.addf %91, %92 : vector<1x1xf32>
    %94 = math.rsqrt %93 : vector<1x1xf32>
    %95 = vector.broadcast %94 : vector<1x1xf32> to vector<16x16xf32>
    %96 = arith.mulf %84, %95 : vector<16x16xf32>
    %c0_38 = arith.constant 0 : index
    %c1_39 = arith.constant 1 : index
    %c0_40 = arith.constant 0 : index
    %c0_41 = arith.constant 0 : index
    %97 = vector.load %arg1[%c0_38, %c1_39, %c0_40, %c0_41] : memref<1x4x16x16xf32, #tpu.memory_space<vmem>>, vector<1x1x16x16xf32>
    %98 = vector.shape_cast %97 : vector<1x1x16x16xf32> to vector<16x16xf32>
    %cst_42 = arith.constant 0.000000e+00 : f32
    %99 = vector.broadcast %cst_42 : f32 to vector<16x16xf32>
    %c1_i32_43 = arith.constant 1 : i32
    %100 = tpu.dynamic_rotate %98 by %c1_i32_43 dim 0 : vector<16x16xf32>, i32 -> vector<16x16xf32>
    %c1_i32_44 = arith.constant 1 : i32
    %101 = tpu.dynamic_rotate %100 by %c1_i32_44 dim 1 : vector<16x16xf32>, i32 -> vector<16x16xf32>
    %cst_45 = arith.constant 0.000000e+00 : f32
    %102 = vector.broadcast %cst_45 : f32 to vector<16x16xf32>
    %103 = arith.select %10, %101, %102 : vector<16x16xi1>, vector<16x16xf32>
    %c1_46 = arith.constant 1 : index
    %c0_47 = arith.constant 0 : index
    %104 = memref.load %arg2[%c1_46, %c0_47] : memref<4x9xf32, #tpu.memory_space<smem>>
    %105 = vector.broadcast %104 : f32 to vector<16x16xf32>
    %106 = arith.mulf %103, %105 : vector<16x16xf32>
    %107 = arith.addf %99, %106 : vector<16x16xf32>
    %cst_48 = arith.constant 0.000000e+00 : f32
    %108 = vector.broadcast %cst_48 : f32 to vector<16x16xf32>
    %109 = arith.select %3, %100, %108 : vector<16x16xi1>, vector<16x16xf32>
    %c1_49 = arith.constant 1 : index
    %c1_50 = arith.constant 1 : index
    %110 = memref.load %arg2[%c1_49, %c1_50] : memref<4x9xf32, #tpu.memory_space<smem>>
    %111 = vector.broadcast %110 : f32 to vector<16x16xf32>
    %112 = arith.mulf %109, %111 : vector<16x16xf32>
    %113 = arith.addf %107, %112 : vector<16x16xf32>
    %c15_i32_51 = arith.constant 15 : i32
    %114 = tpu.dynamic_rotate %100 by %c15_i32_51 dim 1 : vector<16x16xf32>, i32 -> vector<16x16xf32>
    %cst_52 = arith.constant 0.000000e+00 : f32
    %115 = vector.broadcast %cst_52 : f32 to vector<16x16xf32>
    %116 = arith.select %11, %114, %115 : vector<16x16xi1>, vector<16x16xf32>
    %c1_53 = arith.constant 1 : index
    %c2_54 = arith.constant 2 : index
    %117 = memref.load %arg2[%c1_53, %c2_54] : memref<4x9xf32, #tpu.memory_space<smem>>
    %118 = vector.broadcast %117 : f32 to vector<16x16xf32>
    %119 = arith.mulf %116, %118 : vector<16x16xf32>
    %120 = arith.addf %113, %119 : vector<16x16xf32>
    %c1_i32_55 = arith.constant 1 : i32
    %121 = tpu.dynamic_rotate %98 by %c1_i32_55 dim 1 : vector<16x16xf32>, i32 -> vector<16x16xf32>
    %cst_56 = arith.constant 0.000000e+00 : f32
    %122 = vector.broadcast %cst_56 : f32 to vector<16x16xf32>
    %123 = arith.select %7, %121, %122 : vector<16x16xi1>, vector<16x16xf32>
    %c1_57 = arith.constant 1 : index
    %c3_58 = arith.constant 3 : index
    %124 = memref.load %arg2[%c1_57, %c3_58] : memref<4x9xf32, #tpu.memory_space<smem>>
    %125 = vector.broadcast %124 : f32 to vector<16x16xf32>
    %126 = arith.mulf %123, %125 : vector<16x16xf32>
    %127 = arith.addf %120, %126 : vector<16x16xf32>
    %c1_59 = arith.constant 1 : index
    %c4_60 = arith.constant 4 : index
    %128 = memref.load %arg2[%c1_59, %c4_60] : memref<4x9xf32, #tpu.memory_space<smem>>
    %129 = vector.broadcast %128 : f32 to vector<16x16xf32>
    %130 = arith.mulf %98, %129 : vector<16x16xf32>
    %131 = arith.addf %127, %130 : vector<16x16xf32>
    %c15_i32_61 = arith.constant 15 : i32
    %132 = tpu.dynamic_rotate %98 by %c15_i32_61 dim 1 : vector<16x16xf32>, i32 -> vector<16x16xf32>
    %cst_62 = arith.constant 0.000000e+00 : f32
    %133 = vector.broadcast %cst_62 : f32 to vector<16x16xf32>
    %134 = arith.select %9, %132, %133 : vector<16x16xi1>, vector<16x16xf32>
    %c1_63 = arith.constant 1 : index
    %c5_64 = arith.constant 5 : index
    %135 = memref.load %arg2[%c1_63, %c5_64] : memref<4x9xf32, #tpu.memory_space<smem>>
    %136 = vector.broadcast %135 : f32 to vector<16x16xf32>
    %137 = arith.mulf %134, %136 : vector<16x16xf32>
    %138 = arith.addf %131, %137 : vector<16x16xf32>
    %c15_i32_65 = arith.constant 15 : i32
    %139 = tpu.dynamic_rotate %98 by %c15_i32_65 dim 0 : vector<16x16xf32>, i32 -> vector<16x16xf32>
    %c1_i32_66 = arith.constant 1 : i32
    %140 = tpu.dynamic_rotate %139 by %c1_i32_66 dim 1 : vector<16x16xf32>, i32 -> vector<16x16xf32>
    %cst_67 = arith.constant 0.000000e+00 : f32
    %141 = vector.broadcast %cst_67 : f32 to vector<16x16xf32>
    %142 = arith.select %12, %140, %141 : vector<16x16xi1>, vector<16x16xf32>
    %c1_68 = arith.constant 1 : index
    %c6_69 = arith.constant 6 : index
    %143 = memref.load %arg2[%c1_68, %c6_69] : memref<4x9xf32, #tpu.memory_space<smem>>
    %144 = vector.broadcast %143 : f32 to vector<16x16xf32>
    %145 = arith.mulf %142, %144 : vector<16x16xf32>
    %146 = arith.addf %138, %145 : vector<16x16xf32>
    %cst_70 = arith.constant 0.000000e+00 : f32
    %147 = vector.broadcast %cst_70 : f32 to vector<16x16xf32>
    %148 = arith.select %5, %139, %147 : vector<16x16xi1>, vector<16x16xf32>
    %c1_71 = arith.constant 1 : index
    %c7_72 = arith.constant 7 : index
    %149 = memref.load %arg2[%c1_71, %c7_72] : memref<4x9xf32, #tpu.memory_space<smem>>
    %150 = vector.broadcast %149 : f32 to vector<16x16xf32>
    %151 = arith.mulf %148, %150 : vector<16x16xf32>
    %152 = arith.addf %146, %151 : vector<16x16xf32>
    %c15_i32_73 = arith.constant 15 : i32
    %153 = tpu.dynamic_rotate %139 by %c15_i32_73 dim 1 : vector<16x16xf32>, i32 -> vector<16x16xf32>
    %cst_74 = arith.constant 0.000000e+00 : f32
    %154 = vector.broadcast %cst_74 : f32 to vector<16x16xf32>
    %155 = arith.select %13, %153, %154 : vector<16x16xi1>, vector<16x16xf32>
    %c1_75 = arith.constant 1 : index
    %c8_76 = arith.constant 8 : index
    %156 = memref.load %arg2[%c1_75, %c8_76] : memref<4x9xf32, #tpu.memory_space<smem>>
    %157 = vector.broadcast %156 : f32 to vector<16x16xf32>
    %158 = arith.mulf %155, %157 : vector<16x16xf32>
    %159 = arith.addf %152, %158 : vector<16x16xf32>
    %cst_77 = arith.constant dense<0.000000e+00> : vector<16xf32>
    %160 = vector.multi_reduction <add>, %159, %cst_77 [1] : vector<16x16xf32> to vector<16xf32>
    %161 = vector.shape_cast %160 : vector<16xf32> to vector<16x1xf32>
    %cst_78 = arith.constant dense<0.000000e+00> : vector<1xf32>
    %162 = vector.multi_reduction <add>, %161, %cst_78 [0] : vector<16x1xf32> to vector<1xf32>
    %163 = vector.shape_cast %162 : vector<1xf32> to vector<1x1xf32>
    %cst_79 = arith.constant 3.906250e-03 : f32
    %164 = vector.broadcast %cst_79 : f32 to vector<1x1xf32>
    %165 = arith.mulf %163, %164 : vector<1x1xf32>
    %166 = vector.broadcast %165 : vector<1x1xf32> to vector<16x16xf32>
    %167 = arith.subf %159, %166 : vector<16x16xf32>
    %168 = arith.mulf %167, %167 : vector<16x16xf32>
    %cst_80 = arith.constant dense<0.000000e+00> : vector<16xf32>
    %169 = vector.multi_reduction <add>, %168, %cst_80 [1] : vector<16x16xf32> to vector<16xf32>
    %170 = vector.shape_cast %169 : vector<16xf32> to vector<16x1xf32>
    %cst_81 = arith.constant dense<0.000000e+00> : vector<1xf32>
    %171 = vector.multi_reduction <add>, %170, %cst_81 [0] : vector<16x1xf32> to vector<1xf32>
    %172 = vector.shape_cast %171 : vector<1xf32> to vector<1x1xf32>
    %cst_82 = arith.constant 3.906250e-03 : f32
    %173 = vector.broadcast %cst_82 : f32 to vector<1x1xf32>
    %174 = arith.mulf %172, %173 : vector<1x1xf32>
    %cst_83 = arith.constant 9.99999974E-6 : f32
    %175 = vector.broadcast %cst_83 : f32 to vector<1x1xf32>
    %176 = arith.addf %174, %175 : vector<1x1xf32>
    %177 = math.rsqrt %176 : vector<1x1xf32>
    %178 = vector.broadcast %177 : vector<1x1xf32> to vector<16x16xf32>
    %179 = arith.mulf %167, %178 : vector<16x16xf32>
    %c0_84 = arith.constant 0 : index
    %c2_85 = arith.constant 2 : index
    %c0_86 = arith.constant 0 : index
    %c0_87 = arith.constant 0 : index
    %180 = vector.load %arg1[%c0_84, %c2_85, %c0_86, %c0_87] : memref<1x4x16x16xf32, #tpu.memory_space<vmem>>, vector<1x1x16x16xf32>
    %181 = vector.shape_cast %180 : vector<1x1x16x16xf32> to vector<16x16xf32>
    %cst_88 = arith.constant 0.000000e+00 : f32
    %182 = vector.broadcast %cst_88 : f32 to vector<16x16xf32>
    %c1_i32_89 = arith.constant 1 : i32
    %183 = tpu.dynamic_rotate %181 by %c1_i32_89 dim 0 : vector<16x16xf32>, i32 -> vector<16x16xf32>
    %c1_i32_90 = arith.constant 1 : i32
    %184 = tpu.dynamic_rotate %183 by %c1_i32_90 dim 1 : vector<16x16xf32>, i32 -> vector<16x16xf32>
    %cst_91 = arith.constant 0.000000e+00 : f32
    %185 = vector.broadcast %cst_91 : f32 to vector<16x16xf32>
    %186 = arith.select %10, %184, %185 : vector<16x16xi1>, vector<16x16xf32>
    %c2_92 = arith.constant 2 : index
    %c0_93 = arith.constant 0 : index
    %187 = memref.load %arg2[%c2_92, %c0_93] : memref<4x9xf32, #tpu.memory_space<smem>>
    %188 = vector.broadcast %187 : f32 to vector<16x16xf32>
    %189 = arith.mulf %186, %188 : vector<16x16xf32>
    %190 = arith.addf %182, %189 : vector<16x16xf32>
    %cst_94 = arith.constant 0.000000e+00 : f32
    %191 = vector.broadcast %cst_94 : f32 to vector<16x16xf32>
    %192 = arith.select %3, %183, %191 : vector<16x16xi1>, vector<16x16xf32>
    %c2_95 = arith.constant 2 : index
    %c1_96 = arith.constant 1 : index
    %193 = memref.load %arg2[%c2_95, %c1_96] : memref<4x9xf32, #tpu.memory_space<smem>>
    %194 = vector.broadcast %193 : f32 to vector<16x16xf32>
    %195 = arith.mulf %192, %194 : vector<16x16xf32>
    %196 = arith.addf %190, %195 : vector<16x16xf32>
    %c15_i32_97 = arith.constant 15 : i32
    %197 = tpu.dynamic_rotate %183 by %c15_i32_97 dim 1 : vector<16x16xf32>, i32 -> vector<16x16xf32>
    %cst_98 = arith.constant 0.000000e+00 : f32
    %198 = vector.broadcast %cst_98 : f32 to vector<16x16xf32>
    %199 = arith.select %11, %197, %198 : vector<16x16xi1>, vector<16x16xf32>
    %c2_99 = arith.constant 2 : index
    %c2_100 = arith.constant 2 : index
    %200 = memref.load %arg2[%c2_99, %c2_100] : memref<4x9xf32, #tpu.memory_space<smem>>
    %201 = vector.broadcast %200 : f32 to vector<16x16xf32>
    %202 = arith.mulf %199, %201 : vector<16x16xf32>
    %203 = arith.addf %196, %202 : vector<16x16xf32>
    %c1_i32_101 = arith.constant 1 : i32
    %204 = tpu.dynamic_rotate %181 by %c1_i32_101 dim 1 : vector<16x16xf32>, i32 -> vector<16x16xf32>
    %cst_102 = arith.constant 0.000000e+00 : f32
    %205 = vector.broadcast %cst_102 : f32 to vector<16x16xf32>
    %206 = arith.select %7, %204, %205 : vector<16x16xi1>, vector<16x16xf32>
    %c2_103 = arith.constant 2 : index
    %c3_104 = arith.constant 3 : index
    %207 = memref.load %arg2[%c2_103, %c3_104] : memref<4x9xf32, #tpu.memory_space<smem>>
    %208 = vector.broadcast %207 : f32 to vector<16x16xf32>
    %209 = arith.mulf %206, %208 : vector<16x16xf32>
    %210 = arith.addf %203, %209 : vector<16x16xf32>
    %c2_105 = arith.constant 2 : index
    %c4_106 = arith.constant 4 : index
    %211 = memref.load %arg2[%c2_105, %c4_106] : memref<4x9xf32, #tpu.memory_space<smem>>
    %212 = vector.broadcast %211 : f32 to vector<16x16xf32>
    %213 = arith.mulf %181, %212 : vector<16x16xf32>
    %214 = arith.addf %210, %213 : vector<16x16xf32>
    %c15_i32_107 = arith.constant 15 : i32
    %215 = tpu.dynamic_rotate %181 by %c15_i32_107 dim 1 : vector<16x16xf32>, i32 -> vector<16x16xf32>
    %cst_108 = arith.constant 0.000000e+00 : f32
    %216 = vector.broadcast %cst_108 : f32 to vector<16x16xf32>
    %217 = arith.select %9, %215, %216 : vector<16x16xi1>, vector<16x16xf32>
    %c2_109 = arith.constant 2 : index
    %c5_110 = arith.constant 5 : index
    %218 = memref.load %arg2[%c2_109, %c5_110] : memref<4x9xf32, #tpu.memory_space<smem>>
    %219 = vector.broadcast %218 : f32 to vector<16x16xf32>
    %220 = arith.mulf %217, %219 : vector<16x16xf32>
    %221 = arith.addf %214, %220 : vector<16x16xf32>
    %c15_i32_111 = arith.constant 15 : i32
    %222 = tpu.dynamic_rotate %181 by %c15_i32_111 dim 0 : vector<16x16xf32>, i32 -> vector<16x16xf32>
    %c1_i32_112 = arith.constant 1 : i32
    %223 = tpu.dynamic_rotate %222 by %c1_i32_112 dim 1 : vector<16x16xf32>, i32 -> vector<16x16xf32>
    %cst_113 = arith.constant 0.000000e+00 : f32
    %224 = vector.broadcast %cst_113 : f32 to vector<16x16xf32>
    %225 = arith.select %12, %223, %224 : vector<16x16xi1>, vector<16x16xf32>
    %c2_114 = arith.constant 2 : index
    %c6_115 = arith.constant 6 : index
    %226 = memref.load %arg2[%c2_114, %c6_115] : memref<4x9xf32, #tpu.memory_space<smem>>
    %227 = vector.broadcast %226 : f32 to vector<16x16xf32>
    %228 = arith.mulf %225, %227 : vector<16x16xf32>
    %229 = arith.addf %221, %228 : vector<16x16xf32>
    %cst_116 = arith.constant 0.000000e+00 : f32
    %230 = vector.broadcast %cst_116 : f32 to vector<16x16xf32>
    %231 = arith.select %5, %222, %230 : vector<16x16xi1>, vector<16x16xf32>
    %c2_117 = arith.constant 2 : index
    %c7_118 = arith.constant 7 : index
    %232 = memref.load %arg2[%c2_117, %c7_118] : memref<4x9xf32, #tpu.memory_space<smem>>
    %233 = vector.broadcast %232 : f32 to vector<16x16xf32>
    %234 = arith.mulf %231, %233 : vector<16x16xf32>
    %235 = arith.addf %229, %234 : vector<16x16xf32>
    %c15_i32_119 = arith.constant 15 : i32
    %236 = tpu.dynamic_rotate %222 by %c15_i32_119 dim 1 : vector<16x16xf32>, i32 -> vector<16x16xf32>
    %cst_120 = arith.constant 0.000000e+00 : f32
    %237 = vector.broadcast %cst_120 : f32 to vector<16x16xf32>
    %238 = arith.select %13, %236, %237 : vector<16x16xi1>, vector<16x16xf32>
    %c2_121 = arith.constant 2 : index
    %c8_122 = arith.constant 8 : index
    %239 = memref.load %arg2[%c2_121, %c8_122] : memref<4x9xf32, #tpu.memory_space<smem>>
    %240 = vector.broadcast %239 : f32 to vector<16x16xf32>
    %241 = arith.mulf %238, %240 : vector<16x16xf32>
    %242 = arith.addf %235, %241 : vector<16x16xf32>
    %cst_123 = arith.constant dense<0.000000e+00> : vector<16xf32>
    %243 = vector.multi_reduction <add>, %242, %cst_123 [1] : vector<16x16xf32> to vector<16xf32>
    %244 = vector.shape_cast %243 : vector<16xf32> to vector<16x1xf32>
    %cst_124 = arith.constant dense<0.000000e+00> : vector<1xf32>
    %245 = vector.multi_reduction <add>, %244, %cst_124 [0] : vector<16x1xf32> to vector<1xf32>
    %246 = vector.shape_cast %245 : vector<1xf32> to vector<1x1xf32>
    %cst_125 = arith.constant 3.906250e-03 : f32
    %247 = vector.broadcast %cst_125 : f32 to vector<1x1xf32>
    %248 = arith.mulf %246, %247 : vector<1x1xf32>
    %249 = vector.broadcast %248 : vector<1x1xf32> to vector<16x16xf32>
    %250 = arith.subf %242, %249 : vector<16x16xf32>
    %251 = arith.mulf %250, %250 : vector<16x16xf32>
    %cst_126 = arith.constant dense<0.000000e+00> : vector<16xf32>
    %252 = vector.multi_reduction <add>, %251, %cst_126 [1] : vector<16x16xf32> to vector<16xf32>
    %253 = vector.shape_cast %252 : vector<16xf32> to vector<16x1xf32>
    %cst_127 = arith.constant dense<0.000000e+00> : vector<1xf32>
    %254 = vector.multi_reduction <add>, %253, %cst_127 [0] : vector<16x1xf32> to vector<1xf32>
    %255 = vector.shape_cast %254 : vector<1xf32> to vector<1x1xf32>
    %cst_128 = arith.constant 3.906250e-03 : f32
    %256 = vector.broadcast %cst_128 : f32 to vector<1x1xf32>
    %257 = arith.mulf %255, %256 : vector<1x1xf32>
    %cst_129 = arith.constant 9.99999974E-6 : f32
    %258 = vector.broadcast %cst_129 : f32 to vector<1x1xf32>
    %259 = arith.addf %257, %258 : vector<1x1xf32>
    %260 = math.rsqrt %259 : vector<1x1xf32>
    %261 = vector.broadcast %260 : vector<1x1xf32> to vector<16x16xf32>
    %262 = arith.mulf %250, %261 : vector<16x16xf32>
    %c0_130 = arith.constant 0 : index
    %c3_131 = arith.constant 3 : index
    %c0_132 = arith.constant 0 : index
    %c0_133 = arith.constant 0 : index
    %263 = vector.load %arg1[%c0_130, %c3_131, %c0_132, %c0_133] : memref<1x4x16x16xf32, #tpu.memory_space<vmem>>, vector<1x1x16x16xf32>
    %264 = vector.shape_cast %263 : vector<1x1x16x16xf32> to vector<16x16xf32>
    %cst_134 = arith.constant 0.000000e+00 : f32
    %265 = vector.broadcast %cst_134 : f32 to vector<16x16xf32>
    %c1_i32_135 = arith.constant 1 : i32
    %266 = tpu.dynamic_rotate %264 by %c1_i32_135 dim 0 : vector<16x16xf32>, i32 -> vector<16x16xf32>
    %c1_i32_136 = arith.constant 1 : i32
    %267 = tpu.dynamic_rotate %266 by %c1_i32_136 dim 1 : vector<16x16xf32>, i32 -> vector<16x16xf32>
    %cst_137 = arith.constant 0.000000e+00 : f32
    %268 = vector.broadcast %cst_137 : f32 to vector<16x16xf32>
    %269 = arith.select %10, %267, %268 : vector<16x16xi1>, vector<16x16xf32>
    %c3_138 = arith.constant 3 : index
    %c0_139 = arith.constant 0 : index
    %270 = memref.load %arg2[%c3_138, %c0_139] : memref<4x9xf32, #tpu.memory_space<smem>>
    %271 = vector.broadcast %270 : f32 to vector<16x16xf32>
    %272 = arith.mulf %269, %271 : vector<16x16xf32>
    %273 = arith.addf %265, %272 : vector<16x16xf32>
    %cst_140 = arith.constant 0.000000e+00 : f32
    %274 = vector.broadcast %cst_140 : f32 to vector<16x16xf32>
    %275 = arith.select %3, %266, %274 : vector<16x16xi1>, vector<16x16xf32>
    %c3_141 = arith.constant 3 : index
    %c1_142 = arith.constant 1 : index
    %276 = memref.load %arg2[%c3_141, %c1_142] : memref<4x9xf32, #tpu.memory_space<smem>>
    %277 = vector.broadcast %276 : f32 to vector<16x16xf32>
    %278 = arith.mulf %275, %277 : vector<16x16xf32>
    %279 = arith.addf %273, %278 : vector<16x16xf32>
    %c15_i32_143 = arith.constant 15 : i32
    %280 = tpu.dynamic_rotate %266 by %c15_i32_143 dim 1 : vector<16x16xf32>, i32 -> vector<16x16xf32>
    %cst_144 = arith.constant 0.000000e+00 : f32
    %281 = vector.broadcast %cst_144 : f32 to vector<16x16xf32>
    %282 = arith.select %11, %280, %281 : vector<16x16xi1>, vector<16x16xf32>
    %c3_145 = arith.constant 3 : index
    %c2_146 = arith.constant 2 : index
    %283 = memref.load %arg2[%c3_145, %c2_146] : memref<4x9xf32, #tpu.memory_space<smem>>
    %284 = vector.broadcast %283 : f32 to vector<16x16xf32>
    %285 = arith.mulf %282, %284 : vector<16x16xf32>
    %286 = arith.addf %279, %285 : vector<16x16xf32>
    %c1_i32_147 = arith.constant 1 : i32
    %287 = tpu.dynamic_rotate %264 by %c1_i32_147 dim 1 : vector<16x16xf32>, i32 -> vector<16x16xf32>
    %cst_148 = arith.constant 0.000000e+00 : f32
    %288 = vector.broadcast %cst_148 : f32 to vector<16x16xf32>
    %289 = arith.select %7, %287, %288 : vector<16x16xi1>, vector<16x16xf32>
    %c3_149 = arith.constant 3 : index
    %c3_150 = arith.constant 3 : index
    %290 = memref.load %arg2[%c3_149, %c3_150] : memref<4x9xf32, #tpu.memory_space<smem>>
    %291 = vector.broadcast %290 : f32 to vector<16x16xf32>
    %292 = arith.mulf %289, %291 : vector<16x16xf32>
    %293 = arith.addf %286, %292 : vector<16x16xf32>
    %c3_151 = arith.constant 3 : index
    %c4_152 = arith.constant 4 : index
    %294 = memref.load %arg2[%c3_151, %c4_152] : memref<4x9xf32, #tpu.memory_space<smem>>
    %295 = vector.broadcast %294 : f32 to vector<16x16xf32>
    %296 = arith.mulf %264, %295 : vector<16x16xf32>
    %297 = arith.addf %293, %296 : vector<16x16xf32>
    %c15_i32_153 = arith.constant 15 : i32
    %298 = tpu.dynamic_rotate %264 by %c15_i32_153 dim 1 : vector<16x16xf32>, i32 -> vector<16x16xf32>
    %cst_154 = arith.constant 0.000000e+00 : f32
    %299 = vector.broadcast %cst_154 : f32 to vector<16x16xf32>
    %300 = arith.select %9, %298, %299 : vector<16x16xi1>, vector<16x16xf32>
    %c3_155 = arith.constant 3 : index
    %c5_156 = arith.constant 5 : index
    %301 = memref.load %arg2[%c3_155, %c5_156] : memref<4x9xf32, #tpu.memory_space<smem>>
    %302 = vector.broadcast %301 : f32 to vector<16x16xf32>
    %303 = arith.mulf %300, %302 : vector<16x16xf32>
    %304 = arith.addf %297, %303 : vector<16x16xf32>
    %c15_i32_157 = arith.constant 15 : i32
    %305 = tpu.dynamic_rotate %264 by %c15_i32_157 dim 0 : vector<16x16xf32>, i32 -> vector<16x16xf32>
    %c1_i32_158 = arith.constant 1 : i32
    %306 = tpu.dynamic_rotate %305 by %c1_i32_158 dim 1 : vector<16x16xf32>, i32 -> vector<16x16xf32>
    %cst_159 = arith.constant 0.000000e+00 : f32
    %307 = vector.broadcast %cst_159 : f32 to vector<16x16xf32>
    %308 = arith.select %12, %306, %307 : vector<16x16xi1>, vector<16x16xf32>
    %c3_160 = arith.constant 3 : index
    %c6_161 = arith.constant 6 : index
    %309 = memref.load %arg2[%c3_160, %c6_161] : memref<4x9xf32, #tpu.memory_space<smem>>
    %310 = vector.broadcast %309 : f32 to vector<16x16xf32>
    %311 = arith.mulf %308, %310 : vector<16x16xf32>
    %312 = arith.addf %304, %311 : vector<16x16xf32>
    %cst_162 = arith.constant 0.000000e+00 : f32
    %313 = vector.broadcast %cst_162 : f32 to vector<16x16xf32>
    %314 = arith.select %5, %305, %313 : vector<16x16xi1>, vector<16x16xf32>
    %c3_163 = arith.constant 3 : index
    %c7_164 = arith.constant 7 : index
    %315 = memref.load %arg2[%c3_163, %c7_164] : memref<4x9xf32, #tpu.memory_space<smem>>
    %316 = vector.broadcast %315 : f32 to vector<16x16xf32>
    %317 = arith.mulf %314, %316 : vector<16x16xf32>
    %318 = arith.addf %312, %317 : vector<16x16xf32>
    %c15_i32_165 = arith.constant 15 : i32
    %319 = tpu.dynamic_rotate %305 by %c15_i32_165 dim 1 : vector<16x16xf32>, i32 -> vector<16x16xf32>
    %cst_166 = arith.constant 0.000000e+00 : f32
    %320 = vector.broadcast %cst_166 : f32 to vector<16x16xf32>
    %321 = arith.select %13, %319, %320 : vector<16x16xi1>, vector<16x16xf32>
    %c3_167 = arith.constant 3 : index
    %c8_168 = arith.constant 8 : index
    %322 = memref.load %arg2[%c3_167, %c8_168] : memref<4x9xf32, #tpu.memory_space<smem>>
    %323 = vector.broadcast %322 : f32 to vector<16x16xf32>
    %324 = arith.mulf %321, %323 : vector<16x16xf32>
    %325 = arith.addf %318, %324 : vector<16x16xf32>
    %cst_169 = arith.constant dense<0.000000e+00> : vector<16xf32>
    %326 = vector.multi_reduction <add>, %325, %cst_169 [1] : vector<16x16xf32> to vector<16xf32>
    %327 = vector.shape_cast %326 : vector<16xf32> to vector<16x1xf32>
    %cst_170 = arith.constant dense<0.000000e+00> : vector<1xf32>
    %328 = vector.multi_reduction <add>, %327, %cst_170 [0] : vector<16x1xf32> to vector<1xf32>
    %329 = vector.shape_cast %328 : vector<1xf32> to vector<1x1xf32>
    %cst_171 = arith.constant 3.906250e-03 : f32
    %330 = vector.broadcast %cst_171 : f32 to vector<1x1xf32>
    %331 = arith.mulf %329, %330 : vector<1x1xf32>
    %332 = vector.broadcast %331 : vector<1x1xf32> to vector<16x16xf32>
    %333 = arith.subf %325, %332 : vector<16x16xf32>
    %334 = arith.mulf %333, %333 : vector<16x16xf32>
    %cst_172 = arith.constant dense<0.000000e+00> : vector<16xf32>
    %335 = vector.multi_reduction <add>, %334, %cst_172 [1] : vector<16x16xf32> to vector<16xf32>
    %336 = vector.shape_cast %335 : vector<16xf32> to vector<16x1xf32>
    %cst_173 = arith.constant dense<0.000000e+00> : vector<1xf32>
    %337 = vector.multi_reduction <add>, %336, %cst_173 [0] : vector<16x1xf32> to vector<1xf32>
    %338 = vector.shape_cast %337 : vector<1xf32> to vector<1x1xf32>
    %cst_174 = arith.constant 3.906250e-03 : f32
    %339 = vector.broadcast %cst_174 : f32 to vector<1x1xf32>
    %340 = arith.mulf %338, %339 : vector<1x1xf32>
    %cst_175 = arith.constant 9.99999974E-6 : f32
    %341 = vector.broadcast %cst_175 : f32 to vector<1x1xf32>
    %342 = arith.addf %340, %341 : vector<1x1xf32>
    %343 = math.rsqrt %342 : vector<1x1xf32>
    %344 = vector.broadcast %343 : vector<1x1xf32> to vector<16x16xf32>
    %345 = arith.mulf %333, %344 : vector<16x16xf32>
    %c0_176 = arith.constant 0 : index
    %c0_177 = arith.constant 0 : index
    %346 = memref.load %arg3[%c0_176, %c0_177] : memref<8x4xf32, #tpu.memory_space<smem>>
    %347 = vector.broadcast %346 : f32 to vector<16x16xf32>
    %348 = arith.mulf %96, %347 : vector<16x16xf32>
    %c0_178 = arith.constant 0 : index
    %c1_179 = arith.constant 1 : index
    %349 = memref.load %arg3[%c0_178, %c1_179] : memref<8x4xf32, #tpu.memory_space<smem>>
    %350 = vector.broadcast %349 : f32 to vector<16x16xf32>
    %351 = arith.mulf %179, %350 : vector<16x16xf32>
    %352 = arith.addf %348, %351 : vector<16x16xf32>
    %c0_180 = arith.constant 0 : index
    %c2_181 = arith.constant 2 : index
    %353 = memref.load %arg3[%c0_180, %c2_181] : memref<8x4xf32, #tpu.memory_space<smem>>
    %354 = vector.broadcast %353 : f32 to vector<16x16xf32>
    %355 = arith.mulf %262, %354 : vector<16x16xf32>
    %356 = arith.addf %352, %355 : vector<16x16xf32>
    %c0_182 = arith.constant 0 : index
    %c3_183 = arith.constant 3 : index
    %357 = memref.load %arg3[%c0_182, %c3_183] : memref<8x4xf32, #tpu.memory_space<smem>>
    %358 = vector.broadcast %357 : f32 to vector<16x16xf32>
    %359 = arith.mulf %345, %358 : vector<16x16xf32>
    %360 = arith.addf %356, %359 : vector<16x16xf32>
    %c0_184 = arith.constant 0 : index
    %361 = memref.load %arg4[%c0_184] : memref<8xf32, #tpu.memory_space<smem>>
    %362 = vector.broadcast %361 : f32 to vector<16x16xf32>
    %363 = arith.addf %360, %362 : vector<16x16xf32>
    %c0_185 = arith.constant 0 : index
    %c0_186 = arith.constant 0 : index
    %c0_187 = arith.constant 0 : index
    %c0_188 = arith.constant 0 : index
    %364 = vector.load %arg5[%c0_185, %c0_186, %c0_187, %c0_188] : memref<1x8x16x16xf32, #tpu.memory_space<vmem>>, vector<1x1x16x16xf32>
    %365 = vector.shape_cast %364 : vector<1x1x16x16xf32> to vector<16x16xf32>
    %366 = vector.shape_cast %363 : vector<16x16xf32> to vector<1x1x16x16xf32>
    tpu.vector_store %arg5[%c0_185, %c0_186, %c0_187, %c0_188], %366 {strides = array<i32>} : memref<1x8x16x16xf32, #tpu.memory_space<vmem>>, vector<1x1x16x16xf32>,
    %c1_189 = arith.constant 1 : index
    %c0_190 = arith.constant 0 : index
    %367 = memref.load %arg3[%c1_189, %c0_190] : memref<8x4xf32, #tpu.memory_space<smem>>
    %368 = vector.broadcast %367 : f32 to vector<16x16xf32>
    %369 = arith.mulf %96, %368 : vector<16x16xf32>
    %c1_191 = arith.constant 1 : index
    %c1_192 = arith.constant 1 : index
    %370 = memref.load %arg3[%c1_191, %c1_192] : memref<8x4xf32, #tpu.memory_space<smem>>
    %371 = vector.broadcast %370 : f32 to vector<16x16xf32>
    %372 = arith.mulf %179, %371 : vector<16x16xf32>
    %373 = arith.addf %369, %372 : vector<16x16xf32>
    %c1_193 = arith.constant 1 : index
    %c2_194 = arith.constant 2 : index
    %374 = memref.load %arg3[%c1_193, %c2_194] : memref<8x4xf32, #tpu.memory_space<smem>>
    %375 = vector.broadcast %374 : f32 to vector<16x16xf32>
    %376 = arith.mulf %262, %375 : vector<16x16xf32>
    %377 = arith.addf %373, %376 : vector<16x16xf32>
    %c1_195 = arith.constant 1 : index
    %c3_196 = arith.constant 3 : index
    %378 = memref.load %arg3[%c1_195, %c3_196] : memref<8x4xf32, #tpu.memory_space<smem>>
    %379 = vector.broadcast %378 : f32 to vector<16x16xf32>
    %380 = arith.mulf %345, %379 : vector<16x16xf32>
    %381 = arith.addf %377, %380 : vector<16x16xf32>
    %c1_197 = arith.constant 1 : index
    %382 = memref.load %arg4[%c1_197] : memref<8xf32, #tpu.memory_space<smem>>
    %383 = vector.broadcast %382 : f32 to vector<16x16xf32>
    %384 = arith.addf %381, %383 : vector<16x16xf32>
    %c0_198 = arith.constant 0 : index
    %c1_199 = arith.constant 1 : index
    %c0_200 = arith.constant 0 : index
    %c0_201 = arith.constant 0 : index
    %385 = vector.load %arg5[%c0_198, %c1_199, %c0_200, %c0_201] : memref<1x8x16x16xf32, #tpu.memory_space<vmem>>, vector<1x1x16x16xf32>
    %386 = vector.shape_cast %385 : vector<1x1x16x16xf32> to vector<16x16xf32>
    %387 = vector.shape_cast %384 : vector<16x16xf32> to vector<1x1x16x16xf32>
    tpu.vector_store %arg5[%c0_198, %c1_199, %c0_200, %c0_201], %387 {strides = array<i32>} : memref<1x8x16x16xf32, #tpu.memory_space<vmem>>, vector<1x1x16x16xf32>,
    %c2_202 = arith.constant 2 : index
    %c0_203 = arith.constant 0 : index
    %388 = memref.load %arg3[%c2_202, %c0_203] : memref<8x4xf32, #tpu.memory_space<smem>>
    %389 = vector.broadcast %388 : f32 to vector<16x16xf32>
    %390 = arith.mulf %96, %389 : vector<16x16xf32>
    %c2_204 = arith.constant 2 : index
    %c1_205 = arith.constant 1 : index
    %391 = memref.load %arg3[%c2_204, %c1_205] : memref<8x4xf32, #tpu.memory_space<smem>>
    %392 = vector.broadcast %391 : f32 to vector<16x16xf32>
    %393 = arith.mulf %179, %392 : vector<16x16xf32>
    %394 = arith.addf %390, %393 : vector<16x16xf32>
    %c2_206 = arith.constant 2 : index
    %c2_207 = arith.constant 2 : index
    %395 = memref.load %arg3[%c2_206, %c2_207] : memref<8x4xf32, #tpu.memory_space<smem>>
    %396 = vector.broadcast %395 : f32 to vector<16x16xf32>
    %397 = arith.mulf %262, %396 : vector<16x16xf32>
    %398 = arith.addf %394, %397 : vector<16x16xf32>
    %c2_208 = arith.constant 2 : index
    %c3_209 = arith.constant 3 : index
    %399 = memref.load %arg3[%c2_208, %c3_209] : memref<8x4xf32, #tpu.memory_space<smem>>
    %400 = vector.broadcast %399 : f32 to vector<16x16xf32>
    %401 = arith.mulf %345, %400 : vector<16x16xf32>
    %402 = arith.addf %398, %401 : vector<16x16xf32>
    %c2_210 = arith.constant 2 : index
    %403 = memref.load %arg4[%c2_210] : memref<8xf32, #tpu.memory_space<smem>>
    %404 = vector.broadcast %403 : f32 to vector<16x16xf32>
    %405 = arith.addf %402, %404 : vector<16x16xf32>
    %c0_211 = arith.constant 0 : index
    %c2_212 = arith.constant 2 : index
    %c0_213 = arith.constant 0 : index
    %c0_214 = arith.constant 0 : index
    %406 = vector.load %arg5[%c0_211, %c2_212, %c0_213, %c0_214] : memref<1x8x16x16xf32, #tpu.memory_space<vmem>>, vector<1x1x16x16xf32>
    %407 = vector.shape_cast %406 : vector<1x1x16x16xf32> to vector<16x16xf32>
    %408 = vector.shape_cast %405 : vector<16x16xf32> to vector<1x1x16x16xf32>
    tpu.vector_store %arg5[%c0_211, %c2_212, %c0_213, %c0_214], %408 {strides = array<i32>} : memref<1x8x16x16xf32, #tpu.memory_space<vmem>>, vector<1x1x16x16xf32>,
    %c3_215 = arith.constant 3 : index
    %c0_216 = arith.constant 0 : index
    %409 = memref.load %arg3[%c3_215, %c0_216] : memref<8x4xf32, #tpu.memory_space<smem>>
    %410 = vector.broadcast %409 : f32 to vector<16x16xf32>
    %411 = arith.mulf %96, %410 : vector<16x16xf32>
    %c3_217 = arith.constant 3 : index
    %c1_218 = arith.constant 1 : index
    %412 = memref.load %arg3[%c3_217, %c1_218] : memref<8x4xf32, #tpu.memory_space<smem>>
    %413 = vector.broadcast %412 : f32 to vector<16x16xf32>
    %414 = arith.mulf %179, %413 : vector<16x16xf32>
    %415 = arith.addf %411, %414 : vector<16x16xf32>
    %c3_219 = arith.constant 3 : index
    %c2_220 = arith.constant 2 : index
    %416 = memref.load %arg3[%c3_219, %c2_220] : memref<8x4xf32, #tpu.memory_space<smem>>
    %417 = vector.broadcast %416 : f32 to vector<16x16xf32>
    %418 = arith.mulf %262, %417 : vector<16x16xf32>
    %419 = arith.addf %415, %418 : vector<16x16xf32>
    %c3_221 = arith.constant 3 : index
    %c3_222 = arith.constant 3 : index
    %420 = memref.load %arg3[%c3_221, %c3_222] : memref<8x4xf32, #tpu.memory_space<smem>>
    %421 = vector.broadcast %420 : f32 to vector<16x16xf32>
    %422 = arith.mulf %345, %421 : vector<16x16xf32>
    %423 = arith.addf %419, %422 : vector<16x16xf32>
    %c3_223 = arith.constant 3 : index
    %424 = memref.load %arg4[%c3_223] : memref<8xf32, #tpu.memory_space<smem>>
    %425 = vector.broadcast %424 : f32 to vector<16x16xf32>
    %426 = arith.addf %423, %425 : vector<16x16xf32>
    %c0_224 = arith.constant 0 : index
    %c3_225 = arith.constant 3 : index
    %c0_226 = arith.constant 0 : index
    %c0_227 = arith.constant 0 : index
    %427 = vector.load %arg5[%c0_224, %c3_225, %c0_226, %c0_227] : memref<1x8x16x16xf32, #tpu.memory_space<vmem>>, vector<1x1x16x16xf32>
    %428 = vector.shape_cast %427 : vector<1x1x16x16xf32> to vector<16x16xf32>
    %429 = vector.shape_cast %426 : vector<16x16xf32> to vector<1x1x16x16xf32>
    tpu.vector_store %arg5[%c0_224, %c3_225, %c0_226, %c0_227], %429 {strides = array<i32>} : memref<1x8x16x16xf32, #tpu.memory_space<vmem>>, vector<1x1x16x16xf32>,
    %c4_228 = arith.constant 4 : index
    %c0_229 = arith.constant 0 : index
    %430 = memref.load %arg3[%c4_228, %c0_229] : memref<8x4xf32, #tpu.memory_space<smem>>
    %431 = vector.broadcast %430 : f32 to vector<16x16xf32>
    %432 = arith.mulf %96, %431 : vector<16x16xf32>
    %c4_230 = arith.constant 4 : index
    %c1_231 = arith.constant 1 : index
    %433 = memref.load %arg3[%c4_230, %c1_231] : memref<8x4xf32, #tpu.memory_space<smem>>
    %434 = vector.broadcast %433 : f32 to vector<16x16xf32>
    %435 = arith.mulf %179, %434 : vector<16x16xf32>
    %436 = arith.addf %432, %435 : vector<16x16xf32>
    %c4_232 = arith.constant 4 : index
    %c2_233 = arith.constant 2 : index
    %437 = memref.load %arg3[%c4_232, %c2_233] : memref<8x4xf32, #tpu.memory_space<smem>>
    %438 = vector.broadcast %437 : f32 to vector<16x16xf32>
    %439 = arith.mulf %262, %438 : vector<16x16xf32>
    %440 = arith.addf %436, %439 : vector<16x16xf32>
    %c4_234 = arith.constant 4 : index
    %c3_235 = arith.constant 3 : index
    %441 = memref.load %arg3[%c4_234, %c3_235] : memref<8x4xf32, #tpu.memory_space<smem>>
    %442 = vector.broadcast %441 : f32 to vector<16x16xf32>
    %443 = arith.mulf %345, %442 : vector<16x16xf32>
    %444 = arith.addf %440, %443 : vector<16x16xf32>
    %c4_236 = arith.constant 4 : index
    %445 = memref.load %arg4[%c4_236] : memref<8xf32, #tpu.memory_space<smem>>
    %446 = vector.broadcast %445 : f32 to vector<16x16xf32>
    %447 = arith.addf %444, %446 : vector<16x16xf32>
    %c0_237 = arith.constant 0 : index
    %c4_238 = arith.constant 4 : index
    %c0_239 = arith.constant 0 : index
    %c0_240 = arith.constant 0 : index
    %448 = vector.load %arg5[%c0_237, %c4_238, %c0_239, %c0_240] : memref<1x8x16x16xf32, #tpu.memory_space<vmem>>, vector<1x1x16x16xf32>
    %449 = vector.shape_cast %448 : vector<1x1x16x16xf32> to vector<16x16xf32>
    %450 = vector.shape_cast %447 : vector<16x16xf32> to vector<1x1x16x16xf32>
    tpu.vector_store %arg5[%c0_237, %c4_238, %c0_239, %c0_240], %450 {strides = array<i32>} : memref<1x8x16x16xf32, #tpu.memory_space<vmem>>, vector<1x1x16x16xf32>,
    %c5_241 = arith.constant 5 : index
    %c0_242 = arith.constant 0 : index
    %451 = memref.load %arg3[%c5_241, %c0_242] : memref<8x4xf32, #tpu.memory_space<smem>>
    %452 = vector.broadcast %451 : f32 to vector<16x16xf32>
    %453 = arith.mulf %96, %452 : vector<16x16xf32>
    %c5_243 = arith.constant 5 : index
    %c1_244 = arith.constant 1 : index
    %454 = memref.load %arg3[%c5_243, %c1_244] : memref<8x4xf32, #tpu.memory_space<smem>>
    %455 = vector.broadcast %454 : f32 to vector<16x16xf32>
    %456 = arith.mulf %179, %455 : vector<16x16xf32>
    %457 = arith.addf %453, %456 : vector<16x16xf32>
    %c5_245 = arith.constant 5 : index
    %c2_246 = arith.constant 2 : index
    %458 = memref.load %arg3[%c5_245, %c2_246] : memref<8x4xf32, #tpu.memory_space<smem>>
    %459 = vector.broadcast %458 : f32 to vector<16x16xf32>
    %460 = arith.mulf %262, %459 : vector<16x16xf32>
    %461 = arith.addf %457, %460 : vector<16x16xf32>
    %c5_247 = arith.constant 5 : index
    %c3_248 = arith.constant 3 : index
    %462 = memref.load %arg3[%c5_247, %c3_248] : memref<8x4xf32, #tpu.memory_space<smem>>
    %463 = vector.broadcast %462 : f32 to vector<16x16xf32>
    %464 = arith.mulf %345, %463 : vector<16x16xf32>
    %465 = arith.addf %461, %464 : vector<16x16xf32>
    %c5_249 = arith.constant 5 : index
    %466 = memref.load %arg4[%c5_249] : memref<8xf32, #tpu.memory_space<smem>>
    %467 = vector.broadcast %466 : f32 to vector<16x16xf32>
    %468 = arith.addf %465, %467 : vector<16x16xf32>
    %c0_250 = arith.constant 0 : index
    %c5_251 = arith.constant 5 : index
    %c0_252 = arith.constant 0 : index
    %c0_253 = arith.constant 0 : index
    %469 = vector.load %arg5[%c0_250, %c5_251, %c0_252, %c0_253] : memref<1x8x16x16xf32, #tpu.memory_space<vmem>>, vector<1x1x16x16xf32>
    %470 = vector.shape_cast %469 : vector<1x1x16x16xf32> to vector<16x16xf32>
    %471 = vector.shape_cast %468 : vector<16x16xf32> to vector<1x1x16x16xf32>
    tpu.vector_store %arg5[%c0_250, %c5_251, %c0_252, %c0_253], %471 {strides = array<i32>} : memref<1x8x16x16xf32, #tpu.memory_space<vmem>>, vector<1x1x16x16xf32>,
    %c6_254 = arith.constant 6 : index
    %c0_255 = arith.constant 0 : index
    %472 = memref.load %arg3[%c6_254, %c0_255] : memref<8x4xf32, #tpu.memory_space<smem>>
    %473 = vector.broadcast %472 : f32 to vector<16x16xf32>
    %474 = arith.mulf %96, %473 : vector<16x16xf32>
    %c6_256 = arith.constant 6 : index
    %c1_257 = arith.constant 1 : index
    %475 = memref.load %arg3[%c6_256, %c1_257] : memref<8x4xf32, #tpu.memory_space<smem>>
    %476 = vector.broadcast %475 : f32 to vector<16x16xf32>
    %477 = arith.mulf %179, %476 : vector<16x16xf32>
    %478 = arith.addf %474, %477 : vector<16x16xf32>
    %c6_258 = arith.constant 6 : index
    %c2_259 = arith.constant 2 : index
    %479 = memref.load %arg3[%c6_258, %c2_259] : memref<8x4xf32, #tpu.memory_space<smem>>
    %480 = vector.broadcast %479 : f32 to vector<16x16xf32>
    %481 = arith.mulf %262, %480 : vector<16x16xf32>
    %482 = arith.addf %478, %481 : vector<16x16xf32>
    %c6_260 = arith.constant 6 : index
    %c3_261 = arith.constant 3 : index
    %483 = memref.load %arg3[%c6_260, %c3_261] : memref<8x4xf32, #tpu.memory_space<smem>>
    %484 = vector.broadcast %483 : f32 to vector<16x16xf32>
    %485 = arith.mulf %345, %484 : vector<16x16xf32>
    %486 = arith.addf %482, %485 : vector<16x16xf32>
    %c6_262 = arith.constant 6 : index
    %487 = memref.load %arg4[%c6_262] : memref<8xf32, #tpu.memory_space<smem>>
    %488 = vector.broadcast %487 : f32 to vector<16x16xf32>
    %489 = arith.addf %486, %488 : vector<16x16xf32>
    %c0_263 = arith.constant 0 : index
    %c6_264 = arith.constant 6 : index
    %c0_265 = arith.constant 0 : index
    %c0_266 = arith.constant 0 : index
    %490 = vector.load %arg5[%c0_263, %c6_264, %c0_265, %c0_266] : memref<1x8x16x16xf32, #tpu.memory_space<vmem>>, vector<1x1x16x16xf32>
    %491 = vector.shape_cast %490 : vector<1x1x16x16xf32> to vector<16x16xf32>
    %492 = vector.shape_cast %489 : vector<16x16xf32> to vector<1x1x16x16xf32>
    tpu.vector_store %arg5[%c0_263, %c6_264, %c0_265, %c0_266], %492 {strides = array<i32>} : memref<1x8x16x16xf32, #tpu.memory_space<vmem>>, vector<1x1x16x16xf32>,
    %c7_267 = arith.constant 7 : index
    %c0_268 = arith.constant 0 : index
    %493 = memref.load %arg3[%c7_267, %c0_268] : memref<8x4xf32, #tpu.memory_space<smem>>
    %494 = vector.broadcast %493 : f32 to vector<16x16xf32>
    %495 = arith.mulf %96, %494 : vector<16x16xf32>
    %c7_269 = arith.constant 7 : index
    %c1_270 = arith.constant 1 : index
    %496 = memref.load %arg3[%c7_269, %c1_270] : memref<8x4xf32, #tpu.memory_space<smem>>
    %497 = vector.broadcast %496 : f32 to vector<16x16xf32>
    %498 = arith.mulf %179, %497 : vector<16x16xf32>
    %499 = arith.addf %495, %498 : vector<16x16xf32>
    %c7_271 = arith.constant 7 : index
    %c2_272 = arith.constant 2 : index
    %500 = memref.load %arg3[%c7_271, %c2_272] : memref<8x4xf32, #tpu.memory_space<smem>>
    %501 = vector.broadcast %500 : f32 to vector<16x16xf32>
    %502 = arith.mulf %262, %501 : vector<16x16xf32>
    %503 = arith.addf %499, %502 : vector<16x16xf32>
    %c7_273 = arith.constant 7 : index
    %c3_274 = arith.constant 3 : index
    %504 = memref.load %arg3[%c7_273, %c3_274] : memref<8x4xf32, #tpu.memory_space<smem>>
    %505 = vector.broadcast %504 : f32 to vector<16x16xf32>
    %506 = arith.mulf %345, %505 : vector<16x16xf32>
    %507 = arith.addf %503, %506 : vector<16x16xf32>
    %c7_275 = arith.constant 7 : index
    %508 = memref.load %arg4[%c7_275] : memref<8xf32, #tpu.memory_space<smem>>
    %509 = vector.broadcast %508 : f32 to vector<16x16xf32>
    %510 = arith.addf %507, %509 : vector<16x16xf32>
    %c0_276 = arith.constant 0 : index
    %c7_277 = arith.constant 7 : index
    %c0_278 = arith.constant 0 : index
    %c0_279 = arith.constant 0 : index
    %511 = vector.load %arg5[%c0_276, %c7_277, %c0_278, %c0_279] : memref<1x8x16x16xf32, #tpu.memory_space<vmem>>, vector<1x1x16x16xf32>
    %512 = vector.shape_cast %511 : vector<1x1x16x16xf32> to vector<16x16xf32>
    %513 = vector.shape_cast %510 : vector<16x16xf32> to vector<1x1x16x16xf32>
    tpu.vector_store %arg5[%c0_276, %c7_277, %c0_278, %c0_279], %513 {strides = array<i32>} : memref<1x8x16x16xf32, #tpu.memory_space<vmem>>, vector<1x1x16x16xf32>,
    return
  }
  func.func @transform_0(%arg0: i32) -> (i32, i32, i32, i32) {
    %c0_i32 = arith.constant 0 : i32
    %c0_i32_0 = arith.constant 0 : i32
    %c0_i32_1 = arith.constant 0 : i32
    %c0_i32_2 = arith.constant 0 : i32
    return %arg0, %c0_i32, %c0_i32_0, %c0_i32_1 : i32, i32, i32, i32
  }
  func.func @transform_1(%arg0: i32) -> (i32, i32) {
    %c0_i32 = arith.constant 0 : i32
    %c0_i32_0 = arith.constant 0 : i32
    %c0_i32_1 = arith.constant 0 : i32
    return %c0_i32, %c0_i32_0 : i32, i32
  }
  func.func @transform_2(%arg0: i32) -> (i32, i32) {
    %c0_i32 = arith.constant 0 : i32
    %c0_i32_0 = arith.constant 0 : i32
    %c0_i32_1 = arith.constant 0 : i32
    return %c0_i32, %c0_i32_0 : i32, i32
  }
  func.func @transform_3(%arg0: i32) -> i32 {
    %c0_i32 = arith.constant 0 : i32
    %c0_i32_0 = arith.constant 0 : i32
    return %c0_i32 : i32
  }
  func.func @transform_4(%arg0: i32) -> (i32, i32, i32, i32) {
    %c0_i32 = arith.constant 0 : i32
    %c0_i32_0 = arith.constant 0 : i32
    %c0_i32_1 = arith.constant 0 : i32
    %c0_i32_2 = arith.constant 0 : i32
    return %arg0, %c0_i32, %c0_i32_0, %c0_i32_1 : i32, i32, i32, i32
  }
}

</mosaic_0001>

<bundles_post_ra>
// kernel: decomposed_conv2d.1
= control target key start
LH: loop header
LB: loop body
LE: loop exit
PB: predicated region body
PF: predicated region fallthrough
CT: control target
= control target key end

     0   :  { %s3131_s0 = inlined_call_operand.hbm [shape: f32[2,4,16,16], index: 0, kind: input, shape index: {}]   ;;  %s3132_s1 = inlined_call_operand.vmem [shape: f32[4,9], index: 1, kind: input, shape index: {}]   ;;  %s3133_s2 = inlined_call_operand.vmem [shape: f32[8,4], index: 2, kind: input, shape index: {}]   ;;  %s3134_s3 = inlined_call_operand.vmem [shape: f32[8], index: 3, kind: input, shape index: {}]   ;;  %s3135_s4 = inlined_call_operand.hbm [shape: f32[2,8,16,16], index: 4, kind: output, shape index: {}]  }
   0x1   :  { %3186 = sst [smem:[#allocation47_spill]] %s3131_s0 }
   0x2   :  { %3187 = sst [smem:[#allocation48_spill]] %s3132_s1 }
   0x3   :  { %3188 = sst [smem:[#allocation49_spill]] %s3133_s2 }
   0x4   :  { %3189 = sst [smem:[#allocation50_spill]] %s3134_s3 }
   0x5   :  { %3190 = sst [smem:[#allocation51_spill]] %s3135_s4 }
   0x6   :  { %9 = vsyncpa [#allocation3], 0 }
   0x7   :  { %11 = vsyncpa [#allocation3 + $0x1], 0 }
   0x8   :  { %12 = vsyncpa [#allocation5], 0 }
   0x9   :  { %13 = vsyncpa [#allocation8], 0 }
   0xa   :  { %14 = vsyncpa [#allocation4], 0 }
   0xb   :  { %16 = vsyncpa [#allocation4 + $0x1], 0  ;;  %s1801_s15 = smov 0   ;;  %s1803_s16 = smov 0  }
   0xc   :  { %s1805_s17 = smov 0   ;;  %s1807_s18 = smov 0  }
   0xd LB: > { %3191 = sst [smem:[#allocation15_spill]] %s1750_s15  ;;  %s1822_s19 = sadd.s32 4294967295, %s1762_s18   ;;  %s1762_s18 = sphi %s1807_s18, %s3300_s18   ;;  %s1758_s17 = sphi %s1805_s17, %s3303_s17   ;;  %s1754_s16 = sphi %s1803_s16, %s3302_s16   ;;  %s1750_s15 = sphi %s1801_s15, %s3301_s15  }
   0xe   : > { %3192 = sst [smem:[#allocation16_spill]] %s1754_s16  ;;  %s1406_s20 = sadd.s32 4294967294, %s1762_s18  }
   0xf   : > { %3193 = sst [smem:[#allocation17_spill]] %s1758_s17  ;;  %p42_p0 = scmp.ne.s32.totalorder %s1754_s16, %s1750_s15 }
  0x10   : > { %3194 = sst [smem:[#allocation18_spill]] %s1762_s18  ;;  %p3136_p1 = scmp.eq.s32.totalorder %s1822_s19, 0 }
  0x11   : > { %3195 = sst [smem:[#allocation19_spill]] %s1822_s19  ;;  %p135_p3 = scmp.eq.s32.totalorder %s1406_s20, 1 }
  0x12   : > { %p1831_p4 = por %p3136_p1, %p42_p0  ;;  %p1407_p5 = scmp.ge.s32.totalorder %s1762_s18, 1 }
  0x13   : > { %p1836_p6 = por %p135_p3, %p42_p0  ;;  %p142_p7 = scmp.lt.s32.totalorder %s1762_s18, 3 }
  0x14   : > { %s3196_s21 = scalar_select %p1831_p4, 1, 0 }
  0x15   : > { %s3197_s22 = scalar_select %p1836_p6, 1, 0 }
  0x16   : > { %s3199_s2 = sld [smem:[#allocation49_spill]]  ;;  %p1844_p8 = pnand %p1407_p5, %p142_p7 }
  0x17   : > { %3198 = sst [smem:[#allocation20_spill]] %s3197_s22  ;;  %s3201_s1 = sld [smem:[#allocation48_spill]] }
  0x18   : > { %s3200_s26 = scalar_select %p1844_p8, 1, 0 }
  0x19   : > { %p1537_p10 = pneg %p1844_p8  ;;  %s3203_s3 = sld [smem:[#allocation50_spill]] }
  0x1b   : > { %p1856_p11 = pnand %p1537_p10, %p3136_p1 }
  0x1c   : > { %s166_s25 = sshll.u32 %s3199_s2, 4  ;;  %s167_s25 = int_to_ptr.vmem [resolvable:$true] %s166_s25 }
  0x1d   : > { %s155_s29 = sshll.u32 %s3201_s1, 4  ;;  %s1613_s8 = scalar_lea.vmem %s167_s25, 128  ;;  %s156_s29 = int_to_ptr.vmem [resolvable:$true] %s155_s29 }
  0x1e   : > { %p1614_p12 = scmp.ne.s32.totalorder %s167_s25, %s1613_s8  ;;  %p1615_p13 = pneg %p1856_p11 }
  0x1f   : > { %s177_s7 = sshll.u32 %s3203_s3, 4  ;;  %p1621_p5 = scmp.lt.s32.totalorder %s167_s25, %s167_s25  ;;  %s1863_s7 = int_to_ptr.vmem [resolvable:$true] %s177_s7 }
  0x20   : > { %p1616_p0 = pnand %p1615_p13, %p1614_p12  ;;  %p1622_p7 = scmp.lt.s32.totalorder %s1613_s8, %s1613_s8 }
  0x22   : > { %p1617_p3 = pneg %p1616_p0  ;;  %p1623_p10 = por %p1622_p7, %p1621_p5 }
  0x24   : > { %p1624_p9 = pnand %p1623_p10, %p1617_p3 }
  0x26   : > { %1627 = shalt.err (!%p1624_p9)
}
  0x27   : > { %s1764_s9 = smov [#allocation7]   ;;  %s1628_s10 = scalar_lea.vmem %s156_s29, 64 }
  0x28   : > { %1543 = dma.vmem_to_smem (!%p1856_p11), %s167_s25, 128, %s1764_s9, [#allocation8]  }
  0x29   : > { %p1629_p1 = scmp.ne.s32.totalorder %s156_s29, %s1628_s10  ;;  %p1636_p4 = scmp.lt.s32.totalorder %s156_s29, %s156_s29 }
  0x2a   : > { %p1637_p8 = scmp.lt.s32.totalorder %s1628_s10, %s1628_s10 }
  0x2b   : > { %p1631_p2 = pnand %p1629_p1, %p1615_p13 }
  0x2c   : > { %p1638_p12 = por %p1637_p8, %p1636_p4 }
  0x2d   : > { %p1632_p6 = pneg %p1631_p2 }
  0x2f   : > { %p1639_p0 = pnand %p1638_p12, %p1632_p6 }
  0x31   : > { %1642 = shalt.err (!%p1639_p0)
}
  0x32   : > { %s1765_s11 = smov [#allocation6]   ;;  %s1643_s12 = scalar_lea.vmem %s1863_s7, 16 }
  0x33   : > { %1540 = dma.vmem_to_smem (!%p1856_p11), %s156_s29, 64, %s1765_s11, [#allocation5]  }
  0x34   : > { %p1644_p9 = scmp.ne.s32.totalorder %s1863_s7, %s1643_s12  ;;  %p1651_p2 = scmp.lt.s32.totalorder %s1863_s7, %s1863_s7 }
  0x35   : > { %p1652_p5 = scmp.lt.s32.totalorder %s1643_s12, %s1643_s12 }
  0x36   : > { %p1646_p3 = pnand %p1644_p9, %p1615_p13 }
  0x37   : > { %p1653_p4 = por %p1652_p5, %p1651_p2 }
  0x38   : > { %p1647_p1 = pneg %p1646_p3 }
  0x3a   : > { %p1654_p6 = pnand %p1653_p4, %p1647_p1 }
  0x3c   : > { %1657 = shalt.err (!%p1654_p6)
}
  0x3d   : > { %s1766_s13 = smov [#allocation9]   ;;  %s1888_s14 = sadd.s32 1, %s1762_s18  }
  0x3e   : > { %1546 = dma.vmem_to_smem (!%p1856_p11), %s1863_s7, 16, %s1766_s13, [#allocation8]  }
  0x3f   : > { %3204 = sst [smem:[#allocation21_spill]] %s1888_s14  ;;  %s26_s20 = ssub.s32 %s1762_s18, %s1888_s14 }
  0x40   : > { %s29_s23 = sadd.s32 1, %s1758_s17  ;;  %p27_p8 = scmp.eq.s32.totalorder %s26_s20, 0 }
  0x41   : > { %p36_p13 = scmp.ne.s32.totalorder %s1758_s17, %s1754_s16  ;;  %p37_p7 = scmp.eq.s32.totalorder %s1762_s18, 0 }
  0x42   : > { %p1558_p10 = scmp.lt.s32.totalorder %s1762_s18, 2  ;;  %p3206_p0 = scmp.eq.s32.totalorder %s1822_s19, 1 }
  0x43   : > { %s1898_s24 = scalar_select %p27_p8, %s1758_s17, %s29_s23  }
  0x44   : > { %p38_p12 = por %p37_p7, %p36_p13  ;;  %p1902_p9 = por %p3206_p0, %p36_p13 }
  0x45   : > { %3205 = sst [smem:[#allocation22_spill]] %s1898_s24  ;;  %s188_s27 = sand.u32 1, %s1758_s17  }
  0x46   : > { %s3207_s25 = scalar_select %p1902_p9, 1, 0 }
  0x47   : > { %s1519_s28 = sshll.u32 %s1762_s18, 10  ;;  %s1412_s29 = sshll.u32 %s188_s27, 6 }
  0x48   : > { %3208 = sst [smem:[#allocation23_spill]] %s3207_s25  ;;  %s3209_s0 = sld [smem:[#allocation47_spill]] }
  0x49   : > { %s192_s7 = scalar_lea.vmem [#allocation2], %s1412_s29  ;;  %p1913_p11 = pnand %p1558_p10, %p38_p12 }
  0x4a   : > { %s199_s8 = sshll.u32 %s192_s7, 4  ;;  %s1919_s10 = scalar_lea.sflag [#allocation3], %s188_s27  ;;  %s1917_s8 = int_to_ptr.vmem [resolvable:$true] %s199_s8 }
  0x4b   : > { %p1660_p1 = pneg %p1913_p11 }
  0x4e   : > { %s1911_s6 = scalar_lea.hbm %s3209_s0, %s1519_s28  ;;  %s1663_s20 = scalar_lea.hbm %s3209_s0, 2048 }
  0x4f   : > { %s1658_s11 = scalar_lea.hbm %s1911_s6, 1024  ;;  %p1664_p4 = scmp.lt.u32.totalorder %s1911_s6, %s3209_s0 }
  0x50   : > { %p1659_p3 = scmp.ne.s32.totalorder %s1911_s6, %s1658_s11  ;;  %p1665_p6 = scmp.lt.u32.totalorder %s1663_s20, %s1658_s11 }
  0x51   : > { %p1667_p13 = scmp.lt.u32.totalorder %s1658_s11, %s1911_s6 }
  0x52   : > { %p1661_p2 = pnand %p1660_p1, %p1659_p3  ;;  %p1666_p8 = por %p1665_p6, %p1664_p4 }
  0x54   : > { %p1662_p5 = pneg %p1661_p2  ;;  %p1668_p7 = por %p1667_p13, %p1666_p8 }
  0x56   : > { %p1669_p10 = pnand %p1668_p7, %p1662_p5 }
  0x58   : > { %1672 = shalt.err (!%p1669_p10)
}
  0x59   : > { %s1673_s27 = scalar_lea.vmem %s1917_s8, 1024  ;;  %s1767_s29 = smov [#allocation2]  }
  0x5a   : > { %p1674_p12 = scmp.ne.s32.totalorder %s1917_s8, %s1673_s27  ;;  %s1678_s30 = sshll.u32 %s1767_s29, 4  ;;  %s1679_s30 = int_to_ptr.vmem [resolvable:$false] %s1678_s30 }
  0x5b   : > { %s1680_s5 = scalar_lea.vmem %s1679_s30, 2048  ;;  %p1681_p2 = scmp.lt.s32.totalorder %s1917_s8, %s1679_s30 }
  0x5c   : > { %p1676_p0 = pnand %p1674_p12, %p1660_p1  ;;  %p1682_p4 = scmp.lt.s32.totalorder %s1680_s5, %s1673_s27 }
  0x5e   : > { %p1677_p3 = pneg %p1676_p0  ;;  %p1683_p6 = por %p1682_p4, %p1681_p2 }
  0x60   : > { %p1684_p8 = pnand %p1683_p6, %p1677_p3 }
  0x62   : > { %1687 = shalt.err (!%p1684_p8)
}
  0x63   : > { %s1768_s7 = smov 128   ;;  %s1769_s11 = smov 8  }
  0x64   : > { %1550 = dma.hbm_to_vmem [thread:$0]  (!%p1913_p11), %s1911_s6, 1024, %s1917_s8, %s1919_s10, %s1768_s7, %s1768_s7, %s1769_s11  }
  0x65   : > { %p3211_p1 = scmp.ne.s32.totalorder %s3200_s26, 0 }
  0x67   : > { %211 = sbr.rel (%p3211_p1) target bundleno = 967 (0x3c7), region = 36 }
  0x6e   : > { %s1950_s12 = sand.u32 1, %s1754_s16   ;;  %p3213_p5 = scmp.ne.s32.totalorder %s3196_s21, 0 }
  0x6f   : > { %3212 = sst [smem:[#allocation24_spill]] %s1950_s12  ;;  %s1416_s13 = sshll.u32 %s1950_s12, 6 }
  0x70   : > { %s214_s20 = scalar_lea.sflag [#allocation3], %s1950_s12  ;;  %s1954_s23 = scalar_lea.vmem [#allocation2], %s1416_s13 }
  0x71   : > { %1733 = dma.done.wait (%p3213_p5), %s214_s20, 1024  }
  0x72   : > { %1735 = vsyncadd (%p3213_p5), %s214_s20, 4294966272  ;;  %p3214_p11 = scmp.eq.s32.totalorder %s1822_s19, 0 }
  0x74   : > { %1737 = dma.done.wait (%p3214_p11), [#allocation5], 64   ;;  %p3215_p13 = pmov %p3214_p11 }
  0x75   : > { %p3216_p7 = pmov %p3214_p11 }
  0x76   : > { %1739 = vsyncadd (%p3215_p13), [#allocation5], 4294967232 }
  0x77   : > { %1741 = dma.done.wait (%p3216_p7), [#allocation8], 144   ;;  %p3217_p10 = pmov %p3216_p7 }
  0x79   : > { %1743 = vsyncadd (%p3217_p10), [#allocation8], 4294967152 }
  0x7a   : > { %234 = sfence }
  0x7b   : > { %v255_v0 = vlaneseq  ;;  %v1969_v1 = vld [vmem:[%s1954_s23 + $0x10] sm:$0xff]  ;;  %v1972_v2 = vld [vmem:[%s1954_s23 + $0x18] sm:$0xff]  ;;  %v1975_v3 = vld [vmem:[%s1954_s23] sm:$0xff]  ;;  %s1770_s21 = smov 16   ;;  %vm281_vm2 = vcmask 1047680   ;;  %s1771_s26 = smov 113  }
  0x7c   : > { %v475_v4 = vrot.slane %v1969_v1, 7  ;;  %v476_v5 = vrot.slane %v1972_v2, 7  ;;  %v1980_v6 = vld [vmem:[%s1954_s23 + $0x8] sm:$0xff]  ;;  %v276_v7 = vrot.slane %v1975_v3, 7  ;;  %v1989_v10 = vld [vmem:[%s1954_s23 + $0x20] sm:$0xff]  ;;  %v2033_v20 = vld [vmem:[%s1954_s23 + $0x30] sm:$0xff] }
  0x7d   : > { %v1984_v8 = vshrl.u32 %v255_v0, 7  ;;  %v277_v9 = vrot.slane %v1980_v6, 7  ;;  %v1992_v11 = vld [vmem:[%s1954_s23 + $0x28] sm:$0xff]  ;;  %v670_v16 = vrot.slane %v1989_v10, 7  ;;  %v2036_v21 = vld [vmem:[%s1954_s23 + $0x38] sm:$0xff]  ;;  %v865_v22 = vrot.slane %v2033_v20, 7 }
  0x7e   : > { %v671_v17 = vrot.slane %v1992_v11, 7  ;;  %v866_v23 = vrot.slane %v2036_v21, 7  ;;  %v380_v26 = vrot.slane %v1975_v3, 1  ;;  %v381_v27 = vrot.slane %v1980_v6, 1  ;;  %s1772_s6 = smov 127   ;;  %s2333_s8 = sld [smem:[#allocation6 + $0x3]] }
  0x7f   : > { %vm278_vm0 = vcmp.lt.s32.totalorder %v1984_v8, 1  ;;  %vm382_vm1 = vcmp.lt.s32.totalorder %v1984_v8, 7  ;;  %v577_v30 = vrot.slane %v1969_v1, 1  ;;  %v578_v31 = vrot.slane %v1972_v2, 1  ;;  %s2335_s9 = sld [smem:[#allocation6 + $0x83]]  ;;  %s2343_s28 = sld [smem:[#allocation6 + $0x1]] }
  0x80   : > { %v1996_v12 = vsel %vm278_vm0, %v476_v5, %v475_v4  ;;  %v2000_v13 = vsel %vm278_vm0, %v277_v9, %v276_v7  ;;  %v2008_v14 = vsel %vm278_vm0, %v475_v4, %v476_v5  ;;  %v2012_v15 = vsel %vm278_vm0, %v276_v7, %v277_v9  ;;  %s2341_s10 = sld [smem:[#allocation6 + $0x103]]  ;;  %s2345_s27 = sld [smem:[#allocation6 + $0x5]] }
  0x81   : > { %479 = vrot.lane.b32.xlu1 %v1996_v12, %s1770_s21  ;;  %282 = vrot.lane.b32.xlu0 %v2000_v13, %s1770_s21  ;;  %v2022_v18 = vsel %vm278_vm0, %v670_v16, %v671_v17  ;;  %v2026_v19 = vsel %vm278_vm0, %v671_v17, %v670_v16  ;;  %v2050_v24 = vsel %vm278_vm0, %v865_v22, %v866_v23  ;;  %v772_v34 = vrot.slane %v1989_v10, 1  ;;  %s2347_s29 = sld [smem:[#allocation6 + $0x81]]  ;;  %s2349_s30 = sld [smem:[#allocation6 + $0x85]] }
  0x82   : > { %v2054_v25 = vsel %vm278_vm0, %v866_v23, %v865_v22  ;;  %v2073_v28 = vsel %vm382_vm1, %v381_v27, %v380_v26  ;;  %v2077_v29 = vsel %vm382_vm1, %v380_v26, %v381_v27  ;;  %v2087_v32 = vsel %vm382_vm1, %v578_v31, %v577_v30  ;;  %s2351_s5 = sld [smem:[#allocation6]]  ;;  %s2359_s11 = sld [smem:[#allocation6 + $0x4]] }
  0x83   : > { %v2091_v33 = vsel %vm382_vm1, %v577_v30, %v578_v31  ;;  %v773_v35 = vrot.slane %v1992_v11, 1  ;;  %v967_v38 = vrot.slane %v2033_v20, 1  ;;  %v968_v39 = vrot.slane %v2036_v21, 1  ;;  %s2357_s7 = sld [smem:[#allocation6 + $0x80]]  ;;  %s2362_s13 = sld [smem:[#allocation6 + $0x101]] }
  0x84   : > { %vm260_vm4 = vcmp.ge.s32.totalorder %v1984_v8, 1  ;;  %s2364_s20 = sld [smem:[#allocation6 + $0x2]]  ;;  %vm435_vm11 = vcmask 130048   ;;  %s2809_s18 = sld [smem:[#allocation7 + $0x3]] }
  0x85   : > { %482 = vrot.lane.b32.xlu1 %v2008_v14, %s1770_s21  ;;  %285 = vrot.lane.b32.xlu0 %v2012_v15, %s1770_s21  ;;  %v2101_v36 = vsel %vm382_vm1, %v773_v35, %v772_v34  ;;  %v2105_v37 = vsel %vm382_vm1, %v772_v34, %v773_v35  ;;  %v2115_v40 = vsel %vm382_vm1, %v968_v39, %v967_v38  ;;  %s2366_s23 = sld [smem:[#allocation6 + $0x82]]  ;;  %s2811_s22 = sld [smem:[#allocation7 + $0x83]] }
  0x86   : > { %3218 = vst [vmem:[#allocation25_spill] sm:$0xff] %v2105_v37  ;;  %3219 = vst [vmem:[#allocation26_spill] sm:$0xff] %v2115_v40  ;;  %v2119_v41 = vsel %vm382_vm1, %v967_v38, %v968_v39  ;;  %s2793_s0 = sld [smem:[#allocation7 + $0x2]]  ;;  %s2813_s15 = sld [smem:[#allocation7 + $0x103]] }
  0x87   : > { %3220 = vst [vmem:[#allocation27_spill] sm:$0xff] %v2119_v41  ;;  %s2795_s1 = sld [smem:[#allocation7 + $0x82]]  ;;  %s2815_s25 = sld [smem:[#allocation7 + $0x183]] }
  0x88   : > { %s2797_s2 = sld [smem:[#allocation7 + $0x102]]  ;;  %s2817_s4 = sld [smem:[#allocation7 + $0x203]] }
  0x89   : > { %677 = vrot.lane.b32.xlu1 %v2022_v18, %s1770_s21  ;;  %674 = vrot.lane.b32.xlu0 %v2026_v19, %s1770_s21  ;;  %s2799_s3 = sld [smem:[#allocation7 + $0x182]]  ;;  %s2819_s19 = sld [smem:[#allocation7 + $0x283]] }
  0x8a   : > { %s2801_s24 = sld [smem:[#allocation7 + $0x202]]  ;;  %s2824_s12 = sld [smem:[#allocation7 + $0x303]] }
  0x8b   : > { %s2803_s17 = sld [smem:[#allocation7 + $0x282]]  ;;  %3253 = sst [smem:[#allocation39_spill]] %s2811_s22 }
  0x8c   : > { %s2805_s16 = sld [smem:[#allocation7 + $0x302]]  ;;  %3254 = sst [smem:[#allocation40_spill]] %s2813_s15 }
  0x8d   : > { %335 = vrot.lane.b32.xlu1 %v1980_v6, %s1770_s21  ;;  %332 = vrot.lane.b32.xlu0 %v1975_v3, %s1770_s21  ;;  %s2807_s14 = sld [smem:[#allocation7 + $0x382]]  ;;  %3255 = sst [smem:[#allocation41_spill]] %s2815_s25 }
  0x8e   : > { %3256 = sst [smem:[#allocation42_spill]] %s2817_s4  ;;  %s2826_s15 = sld [smem:[#allocation7 + $0x383]] }
  0x8f   : > { %3257 = sst [smem:[#allocation43_spill]] %s2819_s19  ;;  %s2830_s4 = sld [smem:[#allocation9]] }
  0x90   : > { %3258 = sst [smem:[#allocation44_spill]] %s2824_s12  ;;  %s2832_s19 = sld [smem:[#allocation9 + $0x1]] }
  0x91   : > { %532 = vrot.lane.b32.xlu1 %v1972_v2, %s1770_s21  ;;  %529 = vrot.lane.b32.xlu0 %v1969_v1, %s1770_s21 }
  0x93   : > { %3252 = sst [smem:[#allocation38_spill]] %s2807_s14 }
  0x94   : > { %3259 = sst [smem:[#allocation45_spill]] %s2826_s15 }
  0x95   : > { %872 = vrot.lane.b32.xlu1 %v2050_v24, %s1770_s21  ;;  %869 = vrot.lane.b32.xlu0 %v2054_v25, %s1770_s21 }
  0x99   : > { %727 = vrot.lane.b32.xlu1 %v1992_v11, %s1770_s21  ;;  %724 = vrot.lane.b32.xlu0 %v1989_v10, %s1770_s21 }
  0x9d   : > { %922 = vrot.lane.b32.xlu1 %v2036_v21, %s1770_s21  ;;  %919 = vrot.lane.b32.xlu0 %v2033_v20, %s1770_s21 }
  0xa1   : > { %388 = vrot.lane.b32.xlu1 %v2073_v28, %s1770_s21  ;;  %385 = vrot.lane.b32.xlu0 %v2077_v29, %s1770_s21 }
  0xa5   : > { %584 = vrot.lane.b32.xlu1 %v2087_v32, %s1770_s21  ;;  %581 = vrot.lane.b32.xlu0 %v2091_v33, %s1770_s21 }
  0xa9   : > { %779 = vrot.lane.b32.xlu1 %v2101_v36, %s1770_s21  ;;  %776 = vrot.lane.b32.xlu0 %v2105_v37, %s1770_s21 }
  0xad   : > { %974 = vrot.lane.b32.xlu1 %v2115_v40, %s1770_s21  ;;  %971 = vrot.lane.b32.xlu0 %v2119_v41, %s1770_s21 }
  0xf3   : > { %v480_v42 = vpop.permute.xlu1 %479  ;;  %v283_v43 = vpop.permute.xlu0 %282 }
  0xf4   : > { %v284_v9 = vsel %vm281_vm2, %v283_v43, %v2000_v13  ;;  %v481_v17 = vsel %vm281_vm2, %v480_v42, %v1996_v12 }
  0xf7   : > { %v483_v44 = vpop.permute.xlu1 %482  ;;  %v286_v45 = vpop.permute.xlu0 %285 }
  0xf8   : > { %v287_v7 = vsel %vm281_vm2, %v286_v45, %v2012_v15  ;;  %v484_v16 = vsel %vm281_vm2, %v483_v44, %v2008_v14 }
  0xfb   : > { %v678_v46 = vpop.permute.xlu1 %677  ;;  %v675_v47 = vpop.permute.xlu0 %674 }
  0xfc   : > { %v679_v26 = vsel %vm281_vm2, %v678_v46, %v2022_v18  ;;  %v676_v27 = vsel %vm281_vm2, %v675_v47, %v2026_v19 }
  0xff   : > { %v336_v48 = vpop.permute.xlu1 %335  ;;  %v333_v49 = vpop.permute.xlu0 %332 }
 0x100   : > { %v337_v50 = vsel %vm281_vm2, %v336_v48, %v1980_v6  ;;  %v334_v51 = vsel %vm281_vm2, %v333_v49, %v1975_v3 }
 0x101   : > { %340 = vrot.lane.b32.xlu1 %v337_v50, %s1770_s21  ;;  %338 = vrot.lane.b32.xlu0 %v334_v51, %s1770_s21 }
 0x103   : > { %v533_v52 = vpop.permute.xlu1 %532  ;;  %v530_v53 = vpop.permute.xlu0 %529 }
 0x104   : > { %v534_v54 = vsel %vm281_vm2, %v533_v52, %v1972_v2  ;;  %v531_v55 = vsel %vm281_vm2, %v530_v53, %v1969_v1 }
 0x105   : > { %537 = vrot.lane.b32.xlu1 %v534_v54, %s1770_s21  ;;  %535 = vrot.lane.b32.xlu0 %v531_v55, %s1770_s21 }
 0x107   : > { %v873_v56 = vpop.permute.xlu1 %872  ;;  %v870_v57 = vpop.permute.xlu0 %869 }
 0x108   : > { %v874_v30 = vsel %vm281_vm2, %v873_v56, %v2050_v24  ;;  %v871_v31 = vsel %vm281_vm2, %v870_v57, %v2054_v25 }
 0x10b   : > { %v728_v58 = vpop.permute.xlu1 %727  ;;  %v725_v59 = vpop.permute.xlu0 %724 }
 0x10c   : > { %v729_v60 = vsel %vm281_vm2, %v728_v58, %v1992_v11  ;;  %v726_v61 = vsel %vm281_vm2, %v725_v59, %v1989_v10 }
 0x10d   : > { %732 = vrot.lane.b32.xlu1 %v729_v60, %s1770_s21  ;;  %730 = vrot.lane.b32.xlu0 %v726_v61, %s1770_s21 }
 0x10f   : > { %v923_v62 = vpop.permute.xlu1 %922  ;;  %v920_v63 = vpop.permute.xlu0 %919 }
 0x110   : > { %v924_v4 = vsel %vm281_vm2, %v923_v62, %v2036_v21  ;;  %v921_v5 = vsel %vm281_vm2, %v920_v63, %v2033_v20 }
 0x111   : > { %927 = vrot.lane.b32.xlu1 %v924_v4, %s1770_s21  ;;  %925 = vrot.lane.b32.xlu0 %v921_v5, %s1770_s21 }
 0x113   : > { %v389_v22 = vpop.permute.xlu1 %388  ;;  %v386_v23 = vpop.permute.xlu0 %385 }
 0x114   : > { %v390_v38 = vsel %vm281_vm2, %v389_v22, %v2073_v28  ;;  %v387_v39 = vsel %vm281_vm2, %v386_v23, %v2077_v29 }
 0x115   : > { %290 = vrot.lane.b32.xlu1 %v287_v7, %s1770_s21  ;;  %288 = vrot.lane.b32.xlu0 %v284_v9, %s1770_s21 }
 0x117   : > { %v585_v34 = vpop.permute.xlu1 %584  ;;  %v582_v35 = vpop.permute.xlu0 %581 }
 0x118   : > { %v586_v42 = vsel %vm281_vm2, %v585_v34, %v2087_v32  ;;  %v583_v43 = vsel %vm281_vm2, %v582_v35, %v2091_v33 }
 0x119   : > { %487 = vrot.lane.b32.xlu1 %v484_v16, %s1770_s21  ;;  %485 = vrot.lane.b32.xlu0 %v481_v17, %s1770_s21 }
 0x11b   : > { %v780_v44 = vpop.permute.xlu1 %779  ;;  %v777_v45 = vpop.permute.xlu0 %776 }
 0x11c   : > { %v781_v46 = vsel %vm281_vm2, %v780_v44, %v2101_v36  ;;  %v778_v47 = vsel %vm281_vm2, %v777_v45, %v2105_v37 }
 0x11d   : > { %682 = vrot.lane.b32.xlu1 %v679_v26, %s1770_s21  ;;  %680 = vrot.lane.b32.xlu0 %v676_v27, %s1770_s21 }
 0x11f   : > { %v975_v48 = vpop.permute.xlu1 %974  ;;  %v972_v49 = vpop.permute.xlu0 %971 }
 0x120   : > { %v976_v50 = vsel %vm281_vm2, %v975_v48, %v2115_v40  ;;  %v973_v51 = vsel %vm281_vm2, %v972_v49, %v2119_v41 }
 0x121   : > { %877 = vrot.lane.b32.xlu1 %v874_v30, %s1770_s21  ;;  %875 = vrot.lane.b32.xlu0 %v871_v31, %s1770_s21 }
 0x125   : > { %393 = vrot.lane.b32.xlu1 %v390_v38, %s1770_s21  ;;  %391 = vrot.lane.b32.xlu0 %v387_v39, %s1770_s21 }
 0x129   : > { %589 = vrot.lane.b32.xlu1 %v586_v42, %s1770_s21  ;;  %587 = vrot.lane.b32.xlu0 %v583_v43, %s1770_s21 }
 0x12d   : > { %784 = vrot.lane.b32.xlu1 %v781_v46, %s1770_s21  ;;  %782 = vrot.lane.b32.xlu0 %v778_v47, %s1770_s21 }
 0x131   : > { %979 = vrot.lane.b32.xlu1 %v976_v50, %s1770_s21  ;;  %977 = vrot.lane.b32.xlu0 %v973_v51, %s1770_s21  ;;  %s2377_s21 = sld [smem:[#allocation6 + $0x100]] }
 0x173   : > { %v341_v52 = vpop.permute.xlu1 %340  ;;  %v339_v53 = vpop.permute.xlu0 %338 }
 0x174   : > { %v343_v54 = vsel %vm281_vm2, %v341_v52, %v1980_v6  ;;  %v342_v55 = vsel %vm281_vm2, %v339_v53, %v1975_v3 }
 0x175   : > { %348 = vrot.lane.b32.xlu1 %v343_v54, %s1771_s26  ;;  %346 = vrot.lane.b32.xlu0 %v342_v55, %s1771_s26 }
 0x177   : > { %v538_v56 = vpop.permute.xlu1 %537  ;;  %v536_v57 = vpop.permute.xlu0 %535 }
 0x178   : > { %v540_v58 = vsel %vm281_vm2, %v538_v56, %v1972_v2  ;;  %v539_v59 = vsel %vm281_vm2, %v536_v57, %v1969_v1 }
 0x179   : > { %545 = vrot.lane.b32.xlu1 %v540_v58, %s1771_s26  ;;  %543 = vrot.lane.b32.xlu0 %v539_v59, %s1771_s26 }
 0x17f   : > { %v733_v60 = vpop.permute.xlu1 %732  ;;  %v731_v61 = vpop.permute.xlu0 %730 }
 0x180   : > { %v735_v62 = vsel %vm281_vm2, %v733_v60, %v1992_v11  ;;  %v734_v63 = vsel %vm281_vm2, %v731_v61, %v1989_v10 }
 0x181   : > { %740 = vrot.lane.b32.xlu1 %v735_v62, %s1771_s26  ;;  %738 = vrot.lane.b32.xlu0 %v734_v63, %s1771_s26 }
 0x183   : > { %v928_v4 = vpop.permute.xlu1 %927  ;;  %v926_v5 = vpop.permute.xlu0 %925 }
 0x184   : > { %v930_v7 = vsel %vm281_vm2, %v928_v4, %v2036_v21  ;;  %v929_v9 = vsel %vm281_vm2, %v926_v5, %v2033_v20 }
 0x185   : > { %368 = vrot.lane.b32.xlu1 %v343_v54, %s1772_s6  ;;  %366 = vrot.lane.b32.xlu0 %v342_v55, %s1772_s6 }
 0x187   : > { %v291_v16 = vpop.permute.xlu1 %290  ;;  %v289_v17 = vpop.permute.xlu0 %288 }
 0x188   : > { %v293_v22 = vsel %vm281_vm2, %v291_v16, %v2012_v15  ;;  %v292_v23 = vsel %vm281_vm2, %v289_v17, %v2000_v13 }
 0x189   : > { %565 = vrot.lane.b32.xlu1 %v540_v58, %s1772_s6  ;;  %563 = vrot.lane.b32.xlu0 %v539_v59, %s1772_s6 }
 0x18b   : > { %v488_v26 = vpop.permute.xlu1 %487  ;;  %v486_v27 = vpop.permute.xlu0 %485 }
 0x18c   : > { %v490_v30 = vsel %vm281_vm2, %v488_v26, %v2008_v14  ;;  %v489_v31 = vsel %vm281_vm2, %v486_v27, %v1996_v12 }
 0x18d   : > { %935 = vrot.lane.b32.xlu1 %v930_v7, %s1771_s26  ;;  %933 = vrot.lane.b32.xlu0 %v929_v9, %s1771_s26 }
 0x18f   : > { %v683_v34 = vpop.permute.xlu1 %682  ;;  %v681_v35 = vpop.permute.xlu0 %680 }
 0x190   : > { %v685_v38 = vsel %vm281_vm2, %v683_v34, %v2022_v18  ;;  %v684_v39 = vsel %vm281_vm2, %v681_v35, %v2026_v19 }
 0x191   : > { %760 = vrot.lane.b32.xlu1 %v735_v62, %s1772_s6  ;;  %758 = vrot.lane.b32.xlu0 %v734_v63, %s1772_s6  ;;  %v2294_v62 = vand.u32 127, %v255_v0 }
 0x193   : > { %v878_v42 = vpop.permute.xlu1 %877  ;;  %v876_v43 = vpop.permute.xlu0 %875  ;;  %vm264_vm3 = vcmp.ge.s32.totalorder %v2294_v62, 1  ;;  %vm265_vm5 = vcmp.lt.s32.totalorder %v2294_v62, 15 }
 0x194   : > { %v880_v46 = vsel %vm281_vm2, %v878_v42, %v2050_v24  ;;  %v879_v47 = vsel %vm281_vm2, %v876_v43, %v2054_v25  ;;  %vm2373_vm6 = vmand %vm260_vm4, %vm264_vm3 }
 0x195   : > { %955 = vrot.lane.b32.xlu1 %v930_v7, %s1772_s6  ;;  %953 = vrot.lane.b32.xlu0 %v929_v9, %s1772_s6  ;;  %vm2415_vm7 = vmand %vm260_vm4, %vm265_vm5 }
 0x197   : > { %v394_v44 = vpop.permute.xlu1 %393  ;;  %v392_v45 = vpop.permute.xlu0 %391 }
 0x198   : > { %v396_v50 = vsel %vm281_vm2, %v394_v44, %v2073_v28  ;;  %v395_v51 = vsel %vm281_vm2, %v392_v45, %v2077_v29 }
 0x199   : > { %298 = vrot.lane.b32.xlu1 %v293_v22, %s1771_s26  ;;  %296 = vrot.lane.b32.xlu0 %v292_v23, %s1771_s26 }
 0x19b   : > { %v590_v48 = vpop.permute.xlu1 %589  ;;  %v588_v49 = vpop.permute.xlu0 %587 }
 0x19c   : > { %v592_v52 = vsel %vm281_vm2, %v590_v48, %v2087_v32  ;;  %v591_v53 = vsel %vm281_vm2, %v588_v49, %v2091_v33  ;;  %v355_v49 = vstv %s2333_s8  ;;  %s2436_s8 = sld [smem:[#allocation6 + $0x104]] }
 0x19d   : > { %495 = vrot.lane.b32.xlu1 %v490_v30, %s1771_s26  ;;  %493 = vrot.lane.b32.xlu0 %v489_v31, %s1771_s26 }
 0x19f   : > { %v785_v54 = vpop.permute.xlu1 %784  ;;  %v783_v55 = vpop.permute.xlu0 %782 }
 0x1a0   : > { %v787_v56 = vsel %vm281_vm2, %v785_v54, %v2101_v36  ;;  %v786_v57 = vsel %vm281_vm2, %v783_v55, %v2105_v37  ;;  %v510_v55 = vstv %s2347_s29  ;;  %s2495_s29 = sld [smem:[#allocation6 + $0x6]] }
 0x1a1   : > { %320 = vrot.lane.b32.xlu1 %v293_v22, %s1772_s6  ;;  %318 = vrot.lane.b32.xlu0 %v292_v23, %s1772_s6 }
 0x1a3   : > { %v980_v58 = vpop.permute.xlu1 %979  ;;  %v978_v59 = vpop.permute.xlu0 %977 }
 0x1a4   : > { %v982_v60 = vsel %vm281_vm2, %v980_v58, %v2115_v40  ;;  %v981_v61 = vsel %vm281_vm2, %v978_v59, %v2119_v41  ;;  %v305_v58 = vstv %s2351_s5  ;;  %s2507_s5 = sld [smem:[#allocation6 + $0x180]] }
 0x1a5   : > { %517 = vrot.lane.b32.xlu1 %v490_v30, %s1772_s6  ;;  %515 = vrot.lane.b32.xlu0 %v489_v31, %s1772_s6 }
 0x1a9   : > { %690 = vrot.lane.b32.xlu1 %v685_v38, %s1771_s26  ;;  %688 = vrot.lane.b32.xlu0 %v684_v39, %s1771_s26 }
 0x1ad   : > { %712 = vrot.lane.b32.xlu1 %v685_v38, %s1772_s6  ;;  %710 = vrot.lane.b32.xlu0 %v684_v39, %s1772_s6 }
 0x1b1   : > { %885 = vrot.lane.b32.xlu1 %v880_v46, %s1771_s26  ;;  %883 = vrot.lane.b32.xlu0 %v879_v47, %s1771_s26 }
 0x1b5   : > { %907 = vrot.lane.b32.xlu1 %v880_v46, %s1772_s6  ;;  %905 = vrot.lane.b32.xlu0 %v879_v47, %s1772_s6 }
 0x1b9   : > { %401 = vrot.lane.b32.xlu1 %v396_v50, %s1771_s26  ;;  %399 = vrot.lane.b32.xlu0 %v395_v51, %s1771_s26 }
 0x1bd   : > { %597 = vrot.lane.b32.xlu1 %v592_v52, %s1771_s26  ;;  %595 = vrot.lane.b32.xlu0 %v591_v53, %s1771_s26 }
 0x1c1   : > { %792 = vrot.lane.b32.xlu1 %v787_v56, %s1771_s26  ;;  %790 = vrot.lane.b32.xlu0 %v786_v57, %s1771_s26 }
 0x1c5   : > { %423 = vrot.lane.b32.xlu1 %v396_v50, %s1772_s6  ;;  %421 = vrot.lane.b32.xlu0 %v395_v51, %s1772_s6  ;;  %v313_v51 = vstv %s2343_s28  ;;  %s2484_s28 = sld [smem:[#allocation6 + $0x181]] }
 0x1c9   : > { %619 = vrot.lane.b32.xlu1 %v592_v52, %s1772_s6  ;;  %617 = vrot.lane.b32.xlu0 %v591_v53, %s1772_s6  ;;  %v310_v52 = vsel %vm260_vm4, %v2000_v13, 0.0 }
 0x1ca   : > { %v314_v13 = vmul.f32 %v313_v51, %v310_v52  ;;  %v327_v52 = vstv %s2364_s20  ;;  %s2550_s20 = sld [smem:[#allocation6 + $0x106]] }
 0x1cd   : > { %987 = vrot.lane.b32.xlu1 %v982_v60, %s1771_s26  ;;  %985 = vrot.lane.b32.xlu0 %v981_v61, %s1771_s26  ;;  %s2379_s26 = sld [smem:[#allocation6 + $0x84]] }
 0x1d1   : > { %814 = vrot.lane.b32.xlu1 %v787_v56, %s1772_s6  ;;  %812 = vrot.lane.b32.xlu0 %v786_v57, %s1772_s6  ;;  %v507_v56 = vsel %vm260_vm4, %v1996_v12, 0.0  ;;  %v512_v12 = vmul.f32 %v510_v55, %v2008_v14 }
 0x1d3   : > { %v558_v57 = vstv %s2379_s26  ;;  %s2581_s26 = sld [smem:[#allocation6 + $0x107]] }
 0x1d5   : > { %1009 = vrot.lane.b32.xlu1 %v982_v60, %s1772_s6  ;;  %1007 = vrot.lane.b32.xlu0 %v981_v61, %s1772_s6  ;;  %v315_v61 = vmul.f32 %v313_v51, %v2012_v15  ;;  %s2432_s6 = sld [smem:[#allocation6 + $0x102]] }
 0x1e7   : > { %v349_v63 = vpop.permute.xlu1 %348  ;;  %v347_v4 = vpop.permute.xlu0 %346 }
 0x1e8   : > { %v2299_v5 = vsel %vm264_vm3, %v349_v63, 0.0  ;;  %v2303_v7 = vsel %vm264_vm3, %v347_v4, 0.0  ;;  %v502_v63 = vstv %s2357_s7  ;;  %s2518_s7 = sld [smem:[#allocation6 + $0x184]] }
 0x1eb   : > { %v546_v9 = vpop.permute.xlu1 %545  ;;  %v544_v16 = vpop.permute.xlu0 %543 }
 0x1ec   : > { %v2307_v17 = vsel %vm264_vm3, %v546_v9, 0.0  ;;  %v2311_v0 = vsel %vm264_vm3, %v544_v16, 0.0  ;;  %v361_v16 = vstv %s2359_s11  ;;  %s2521_s11 = sld [smem:[#allocation6 + $0x86]] }
 0x1f3   : > { %v741_v22 = vpop.permute.xlu1 %740  ;;  %v739_v23 = vpop.permute.xlu0 %738 }
 0x1f4   : > { %v2315_v26 = vsel %vm264_vm3, %v741_v22, 0.0  ;;  %v2319_v27 = vsel %vm264_vm3, %v739_v23, 0.0  ;;  %v511_v22 = vmul.f32 %v510_v55, %v507_v56  ;;  %v705_v23 = vstv %s2362_s13  ;;  %s2523_s13 = sld [smem:[#allocation6 + $0x7]] }
 0x1f5   : > { %v524_v55 = vstv %s2366_s23  ;;  %v362_v56 = vmul.f32 %v361_v16, %v1975_v3  ;;  %v357_v3 = vmul.f32 %v355_v49, %v2299_v5  ;;  %s2556_s23 = sld [smem:[#allocation6 + $0x87]] }
 0x1f7   : > { %v2321_v30 = vpop.permute.xlu1 %368  ;;  %v2323_v31 = vpop.permute.xlu0 %366 }
 0x1fb   : > { %v2325_v34 = vpop.permute.xlu1 %565  ;;  %v2327_v35 = vpop.permute.xlu0 %563 }
 0x1ff   : > { %v2329_v38 = vpop.permute.xlu1 %935  ;;  %v2331_v39 = vpop.permute.xlu0 %933 }
 0x203   : > { %v2337_v42 = vpop.permute.xlu1 %760  ;;  %v2339_v43 = vpop.permute.xlu0 %758 }
 0x207   : > { %v2353_v44 = vpop.permute.xlu1 %955  ;;  %v2355_v45 = vpop.permute.xlu0 %953 }
 0x208   : > { %3221 = vst [vmem:[#allocation28_spill] sm:$0xff] %v2353_v44  ;;  %3222 = vst [vmem:[#allocation29_spill] sm:$0xff] %v2355_v45 }
 0x20b   : > { %v299_v46 = vpop.permute.xlu1 %298  ;;  %v297_v47 = vpop.permute.xlu0 %296 }
 0x20c   : > { %v303_v59 = vsel %vm264_vm3, %v299_v46, 0.0  ;;  %v302_v60 = vsel %vm2373_vm6, %v297_v47, 0.0  ;;  %v702_v46 = vsel %vm260_vm4, %v2026_v19, 0.0  ;;  %v363_v19 = vmul.f32 %v361_v16, %v1980_v6 }
 0x20d   : > { %v307_v47 = vmul.f32 %v305_v58, %v303_v59  ;;  %v306_v53 = vmul.f32 %v305_v58, %v302_v60  ;;  %v697_v60 = vstv %s2377_s21  ;;  %v356_v16 = vmul.f32 %v355_v49, %v2303_v7  ;;  %s2568_s21 = sld [smem:[#allocation6 + $0x8]] }
 0x20f   : > { %v496_v4 = vpop.permute.xlu1 %495  ;;  %v494_v9 = vpop.permute.xlu0 %493  ;;  %v317_v40 = vadd.f32 %v315_v61, %v307_v47  ;;  %v316_v45 = vadd.f32 %v314_v13, %v306_v53  ;;  %v373_v53 = vsel %vm265_vm5, %v2321_v30, 0.0  ;;  %v3227_v47 = vstv %s2335_s9  ;;  %s2464_s9 = sld [smem:[#allocation6 + $0x105]] }
 0x210   : > { %v500_v15 = vsel %vm264_vm3, %v496_v4, 0.0  ;;  %v499_v51 = vsel %vm2373_vm6, %v494_v9, 0.0  ;;  %v707_v4 = vmul.f32 %v705_v23, %v2022_v18  ;;  %v706_v9 = vmul.f32 %v705_v23, %v702_v46 }
 0x211   : > { %v504_v54 = vmul.f32 %v502_v63, %v500_v15  ;;  %v503_v50 = vmul.f32 %v502_v63, %v499_v51  ;;  %v560_v18 = vmul.f32 %v1972_v2, %v558_v57  ;;  %v559_v63 = vmul.f32 %v1969_v1, %v558_v57 }
 0x213   : > { %v321_v58 = vpop.permute.xlu1 %320  ;;  %v319_v59 = vpop.permute.xlu0 %318  ;;  %v514_v49 = vadd.f32 %v512_v12, %v504_v54  ;;  %v513_v1 = vadd.f32 %v511_v22, %v503_v50 }
 0x214   : > { %v325_v41 = vsel %vm265_vm5, %v321_v58, 0.0  ;;  %v324_v37 = vsel %vm2415_vm7, %v319_v59, 0.0 }
 0x215   : > { %v329_v6 = vmul.f32 %v327_v52, %v325_v41  ;;  %v328_v44 = vmul.f32 %v327_v52, %v324_v37  ;;  %v372_v37 = vsel %vm265_vm5, %v2323_v31, 0.0  ;;  %v554_v31 = vmul.f32 %v3227_v47, %v2307_v17 }
 0x216   : > { %v570_v17 = vsel %vm265_vm5, %v2325_v34, 0.0 }
 0x217   : > { %v331_v41 = vadd.f32 %v329_v6, %v317_v40  ;;  %v330_v5 = vadd.f32 %v328_v44, %v316_v45  ;;  %v518_v7 = vpop.permute.xlu1 %517  ;;  %v516_v2 = vpop.permute.xlu0 %515  ;;  %v3228_v40 = vmov %v3227_v47  ;;  %v3229_v45 = vstv %s2345_s27  ;;  %s2493_s27 = sld [smem:[#allocation6 + $0x183]] }
 0x218   : > { %v522_v57 = vsel %vm265_vm5, %v518_v7, 0.0  ;;  %v521_v61 = vsel %vm2415_vm7, %v516_v2, 0.0  ;;  %v553_v44 = vmul.f32 %v3228_v40, %v2311_v0  ;;  %v377_v15 = vmul.f32 %v3229_v45, %v373_v53 }
 0x219   : > { %v359_v13 = vadd.f32 %v357_v3, %v331_v41  ;;  %v358_v30 = vadd.f32 %v356_v16, %v330_v5  ;;  %v526_v23 = vmul.f32 %v524_v55, %v522_v57  ;;  %v525_v46 = vmul.f32 %v524_v55, %v521_v61 }
 0x21a   : > { %v3230_v54 = vmov %v3229_v45  ;;  %v569_v0 = vsel %vm265_vm5, %v2327_v35, 0.0  ;;  %v719_v53 = vstv %s2432_s6  ;;  %v753_v41 = vstv %s2436_s8  ;;  %s2594_s6 = sld [smem:[#allocation6 + $0x88]]  ;;  %s2619_s8 = sld [smem:[#allocation6 + $0x186]] }
 0x21b   : > { %v376_v50 = vmul.f32 %v3230_v54, %v372_v37  ;;  %v528_v12 = vadd.f32 %v526_v23, %v514_v49  ;;  %v527_v22 = vadd.f32 %v525_v46, %v513_v1  ;;  %v691_v51 = vpop.permute.xlu1 %690  ;;  %v689_v52 = vpop.permute.xlu0 %688  ;;  %v365_v58 = vadd.f32 %v363_v19, %v359_v13 }
 0x21c   : > { %v364_v55 = vadd.f32 %v362_v56, %v358_v30  ;;  %v695_v59 = vsel %vm264_vm3, %v691_v51, 0.0  ;;  %v694_v6 = vsel %vm2373_vm6, %v689_v52, 0.0  ;;  %v3231_v5 = vstv %s2349_s30  ;;  %s2505_s30 = sld [smem:[#allocation6 + $0x185]] }
 0x21d   : > { %v556_v3 = vadd.f32 %v554_v31, %v528_v12  ;;  %v555_v19 = vadd.f32 %v553_v44, %v527_v22  ;;  %v699_v16 = vmul.f32 %v697_v60, %v695_v59  ;;  %v698_v56 = vmul.f32 %v697_v60, %v694_v6 }
 0x21e   : > { %v2471_v37 = vadd.f32 %v377_v15, %v365_v58  ;;  %v2473_v34 = vadd.f32 %v376_v50, %v364_v55  ;;  %v574_v35 = vmul.f32 %v3231_v5, %v570_v17  ;;  %v3232_v7 = vmov %v3231_v5 }
 0x21f   : > { %v573_v2 = vmul.f32 %v3232_v7, %v569_v0  ;;  %v713_v49 = vpop.permute.xlu1 %712  ;;  %v711_v1 = vpop.permute.xlu0 %710  ;;  %v562_v57 = vadd.f32 %v560_v18, %v556_v3  ;;  %v561_v61 = vadd.f32 %v559_v63, %v555_v19  ;;  %v709_v13 = vadd.f32 %v707_v4, %v699_v16 }
 0x220   : > { %v708_v30 = vadd.f32 %v706_v9, %v698_v56  ;;  %v717_v60 = vsel %vm265_vm5, %v713_v49, 0.0  ;;  %v716_v23 = vsel %vm2415_vm7, %v711_v1, 0.0  ;;  %v2491_v18 = vadd.s32 8, %v1984_v8 }
 0x221   : > { %v721_v46 = vmul.f32 %v719_v53, %v717_v60  ;;  %v720_v47 = vmul.f32 %v719_v53, %v716_v23  ;;  %v2486_v31 = vadd.f32 %v574_v35, %v562_v57  ;;  %v2488_v40 = vadd.f32 %v573_v2, %v561_v61 }
 0x222   : > { %v755_v4 = vmul.f32 %v1992_v11, %v753_v41  ;;  %v754_v9 = vmul.f32 %v1989_v10, %v753_v41  ;;  %v3233_v63 = vstv %s2341_s10  ;;  %v767_v51 = vstv %s2464_s9  ;;  %s2516_s10 = sld [smem:[#allocation6 + $0x182]]  ;;  %s2627_s9 = sld [smem:[#allocation6 + $0x187]] }
 0x223   : > { %v749_v44 = vmul.f32 %v3233_v63, %v2315_v26  ;;  %v3234_v45 = vmov %v3233_v63  ;;  %v723_v54 = vadd.f32 %v721_v46, %v709_v13  ;;  %v722_v50 = vadd.f32 %v720_v47, %v708_v30  ;;  %v886_v12 = vpop.permute.xlu1 %885  ;;  %v884_v22 = vpop.permute.xlu0 %883 }
 0x224   : > { %v748_v15 = vmul.f32 %v3234_v45, %v2319_v27  ;;  %v765_v10 = vsel %vm265_vm5, %v2337_v42, 0.0  ;;  %v764_v11 = vsel %vm265_vm5, %v2339_v43, 0.0  ;;  %vm263_vm8 = vcmp.lt.s32.totalorder %v2491_v18, 15 }
 0x225   : > { %v751_v26 = vadd.f32 %v749_v44, %v723_v54  ;;  %v769_v52 = vmul.f32 %v767_v51, %v765_v10  ;;  %v768_v42 = vmul.f32 %v767_v51, %v764_v11  ;;  %v900_v0 = vstv %s2484_s28  ;;  %vm2533_vm9 = vmand %vm263_vm8, %vm264_vm3  ;;  %s2638_s28 = sld [smem:[#allocation6 + $0x108]] }
 0x226   : > { %v750_v27 = vadd.f32 %v748_v15, %v722_v50  ;;  %v897_v59 = vsel %vm260_vm4, %v2054_v25, 0.0  ;;  %v610_v16 = vsel %vm263_vm8, %v2087_v32, 0.0  ;;  %v2547_v8 = vsel %vm263_vm8, %v2101_v36, 0.0  ;;  %vm2614_vm10 = vmand %vm263_vm8, %vm265_vm5 }
 0x227   : > { %v908_v58 = vpop.permute.xlu1 %907  ;;  %v906_v43 = vpop.permute.xlu0 %905  ;;  %v757_v55 = vadd.f32 %v755_v4, %v751_v26  ;;  %v408_v25 = vstv %s2495_s29  ;;  %v942_v56 = vstv %s2493_s27  ;;  %v962_v53 = vstv %s2505_s30  ;;  %s2664_s27 = sld [smem:[#allocation6 + $0x188]] }
 0x228   : > { %v756_v17 = vadd.f32 %v754_v9, %v750_v27  ;;  %v892_v41 = vstv %s2507_s5  ;;  %v902_v5 = vmul.f32 %v900_v0, %v2050_v24  ;;  %v901_v32 = vmul.f32 %v900_v0, %v897_v59  ;;  %s2761_s29 = sld [smem:[#allocation7]] }
 0x229   : > { %v2537_v3 = vadd.f32 %v769_v52, %v757_v55  ;;  %v914_v2 = vstv %s2516_s10  ;;  %v890_v1 = vsel %vm264_vm3, %v886_v12, 0.0  ;;  %v889_v57 = vsel %vm2373_vm6, %v884_v22, 0.0  ;;  %s2763_s30 = sld [smem:[#allocation7 + $0x80]] }
 0x22a   : > { %v2539_v19 = vadd.f32 %v768_v42, %v756_v17  ;;  %v604_v13 = vstv %s2521_s11  ;;  %v416_v30 = vstv %s2523_s13  ;;  %v414_v60 = vsel %vm263_vm8, %v2073_v28, 0.0  ;;  %s2765_s5 = sld [smem:[#allocation7 + $0x100]] }
 0x22b   : > { %v402_v35 = vpop.permute.xlu1 %401  ;;  %v400_v7 = vpop.permute.xlu0 %399  ;;  %v948_v23 = vstv %s2518_s7  ;;  %v912_v46 = vsel %vm265_vm5, %v908_v58, 0.0  ;;  %v911_v47 = vsel %vm2415_vm7, %v906_v43, 0.0  ;;  %v894_v44 = vmul.f32 %v892_v41, %v890_v1  ;;  %s2767_s10 = sld [smem:[#allocation7 + $0x180]] }
 0x22c   : > { %v406_v36 = vsel %vm2533_vm9, %v402_v35, 0.0  ;;  %v405_v49 = vsel %vm264_vm3, %v400_v7, 0.0  ;;  %v893_v45 = vmul.f32 %v892_v41, %v889_v57  ;;  %v2588_v50 = vmul.f32 %v2036_v21, %v948_v23  ;;  %s2769_s7 = sld [smem:[#allocation7 + $0x200]] }
 0x22d   : > { %v410_v24 = vmul.f32 %v408_v25, %v406_v36  ;;  %v409_v61 = vmul.f32 %v408_v25, %v405_v49  ;;  %v915_v12 = vmul.f32 %v914_v2, %v911_v47  ;;  %v799_v22 = vstv %s2550_s20  ;;  %s2771_s11 = sld [smem:[#allocation7 + $0x280]] }
 0x22e   : > { %v417_v51 = vmul.f32 %v416_v30, %v2077_v29  ;;  %v612_v52 = vstv %s2556_s23  ;;  %v418_v21 = vmul.f32 %v416_v30, %v414_v60  ;;  %v904_v42 = vadd.f32 %v902_v5, %v894_v44  ;;  %v3240_v30 = vld [vmem:[#allocation29_spill] sm:$0xff]  ;;  %s2773_s13 = sld [smem:[#allocation7 + $0x300]]  ;;  %s2777_s23 = sld [smem:[#allocation7 + $0x1]] }
 0x22f   : > { %v412_v48 = vadd.f32 %v410_v24, %v2471_v37  ;;  %v411_v4 = vadd.f32 %v409_v61, %v2473_v34  ;;  %v598_v9 = vpop.permute.xlu1 %597  ;;  %v596_v63 = vpop.permute.xlu0 %595  ;;  %v2591_v37 = vmul.f32 %v2033_v20, %v948_v23  ;;  %v916_v34 = vmul.f32 %v914_v2, %v912_v46  ;;  %3244 = sst [smem:[#allocation30_spill]] %s2763_s30  ;;  %s2775_s20 = sld [smem:[#allocation7 + $0x380]] }
 0x230   : > { %v602_v28 = vsel %vm2533_vm9, %v598_v9, 0.0  ;;  %v601_v15 = vsel %vm264_vm3, %v596_v63, 0.0  ;;  %v903_v58 = vadd.f32 %v901_v32, %v893_v45  ;;  %v940_v29 = vsel %vm264_vm3, %v2329_v38, 0.0  ;;  %3245 = sst [smem:[#allocation31_spill]] %s2765_s5 }
 0x231   : > { %v606_v14 = vmul.f32 %v604_v13, %v602_v28  ;;  %v605_v54 = vmul.f32 %v604_v13, %v601_v15  ;;  %v918_v0 = vadd.f32 %v916_v34, %v904_v42  ;;  %v430_v25 = vstv %s2568_s21  ;;  %v3239_v13 = vld [vmem:[#allocation28_spill] sm:$0xff]  ;;  %3246 = sst [smem:[#allocation32_spill]] %s2767_s10  ;;  %s2779_s21 = sld [smem:[#allocation7 + $0x81]] }
 0x232   : > { %v917_v59 = vadd.f32 %v915_v12, %v903_v58  ;;  %v614_v38 = vmul.f32 %v612_v52, %v610_v16  ;;  %v613_v7 = vmul.f32 %v612_v52, %v2091_v33  ;;  %v807_v32 = vstv %s2581_s26  ;;  %3247 = sst [smem:[#allocation33_spill]] %s2769_s7  ;;  %s2781_s26 = sld [smem:[#allocation7 + $0x101]] }
 0x233   : > { %v608_v10 = vadd.f32 %v606_v14, %v2486_v31  ;;  %v607_v11 = vadd.f32 %v605_v54, %v2488_v40  ;;  %v793_v26 = vpop.permute.xlu1 %792  ;;  %v791_v27 = vpop.permute.xlu0 %790  ;;  %v939_v31 = vsel %vm264_vm3, %v2331_v39, 0.0  ;;  %v944_v2 = vmul.f32 %v942_v56, %v940_v29  ;;  %v3241_v54 = vld [vmem:[#allocation26_spill] sm:$0xff]  ;;  %v3242_v29 = vld [vmem:[#allocation25_spill] sm:$0xff] }
 0x234   : > { %v797_v20 = vsel %vm2533_vm9, %v793_v26, 0.0  ;;  %v796_v43 = vsel %vm264_vm3, %v791_v27, 0.0  ;;  %v943_v36 = vmul.f32 %v942_v56, %v939_v31  ;;  %v419_v1 = vadd.f32 %v417_v51, %v411_v4  ;;  %3248 = sst [smem:[#allocation34_spill]] %s2773_s13 }
 0x235   : > { %v801_v40 = vmul.f32 %v799_v22, %v797_v20  ;;  %v800_v55 = vmul.f32 %v799_v22, %v796_v43  ;;  %v420_v57 = vadd.f32 %v418_v21, %v412_v48  ;;  %v946_v24 = vadd.f32 %v944_v2, %v918_v0  ;;  %3249 = sst [smem:[#allocation35_spill]] %s2775_s20 }
 0x236   : > { %v945_v61 = vadd.f32 %v943_v36, %v917_v59  ;;  %v626_v33 = vstv %s2594_s6  ;;  %v960_v56 = vsel %vm265_vm5, %v3239_v13, 0.0  ;;  %v959_v60 = vsel %vm265_vm5, %v3240_v30, 0.0  ;;  %s2783_s6 = sld [smem:[#allocation7 + $0x181]] }
 0x237   : > { %v803_v39 = vadd.f32 %v801_v40, %v2537_v3  ;;  %v2623_v41 = vadd.f32 %v800_v55, %v2539_v19  ;;  %v424_v5 = vpop.permute.xlu1 %423  ;;  %v422_v35 = vpop.permute.xlu0 %421  ;;  %v616_v4 = vadd.f32 %v614_v38, %v608_v10  ;;  %v615_v63 = vadd.f32 %v613_v7, %v607_v11  ;;  %3250 = sst [smem:[#allocation36_spill]] %s2779_s21 }
 0x238   : > { %v428_v16 = vsel %vm2614_vm10, %v424_v5, 0.0  ;;  %v427_v3 = vsel %vm265_vm5, %v422_v35, 0.0  ;;  %v1000_v34 = vsel %vm263_vm8, %v3241_v54, 0.0  ;;  %v952_v12 = vadd.f32 %v2588_v50, %v946_v24  ;;  %3251 = sst [smem:[#allocation37_spill]] %s2781_s26 }
 0x239   : > { %v432_v19 = vmul.f32 %v430_v25, %v428_v16  ;;  %v431_v49 = vmul.f32 %v430_v25, %v427_v3  ;;  %v994_v22 = vstv %s2619_s8  ;;  %v951_v51 = vadd.f32 %v2591_v37, %v945_v61  ;;  %v3243_v25 = vld [vmem:[#allocation27_spill] sm:$0xff]  ;;  %s2785_s8 = sld [smem:[#allocation7 + $0x201]] }
 0x23a   : > { %v809_v52 = vmul.f32 %v807_v32, %v2547_v8  ;;  %v1002_v18 = vstv %s2627_s9  ;;  %v964_v21 = vmul.f32 %v962_v53, %v960_v56  ;;  %v963_v42 = vmul.f32 %v962_v53, %v959_v60  ;;  %s2787_s9 = sld [smem:[#allocation7 + $0x281]] }
 0x23b   : > { %v620_v23 = vpop.permute.xlu1 %619  ;;  %v618_v46 = vpop.permute.xlu0 %617  ;;  %v2646_v47 = vadd.f32 %v431_v49, %v419_v1  ;;  %v2648_v48 = vadd.f32 %v432_v19, %v420_v57  ;;  %v808_v31 = vmul.f32 %v807_v32, %v3242_v29  ;;  %v821_v55 = vstv %s2638_s28  ;;  %s2789_s28 = sld [smem:[#allocation7 + $0x301]] }
 0x23c   : > { %v624_v9 = vsel %vm2614_vm10, %v620_v23, 0.0  ;;  %v623_v44 = vsel %vm265_vm5, %v618_v46, 0.0  ;;  %v966_v40 = vadd.f32 %v964_v21, %v952_v12  ;;  %v965_v8 = vadd.f32 %v963_v42, %v951_v51 }
 0x23d   : > { %v628_v45 = vmul.f32 %v626_v33, %v624_v9  ;;  %v627_v28 = vmul.f32 %v626_v33, %v623_v44  ;;  %v436_v15 = vsel %vm435_vm11, %v2646_v47, 0.0  ;;  %v439_v14 = vsel %vm435_vm11, %v2648_v48, 0.0 }
 0x23e   : > { %437 = vadd.xlane.f32.xlu0 %v436_v15  ;;  %440 = vadd.xlane.f32.xlu1 %v439_v14  ;;  %v811_v53 = vadd.f32 %v809_v52, %v803_v39  ;;  %v1004_v6 = vmul.f32 %v1002_v18, %v1000_v34  ;;  %v1003_v38 = vmul.f32 %v1002_v18, %v3243_v25  ;;  %v1016_v39 = vstv %s2664_s27  ;;  %s2791_s27 = sld [smem:[#allocation7 + $0x381]] }
 0x23f   : > { %v2666_v10 = vadd.f32 %v628_v45, %v616_v4  ;;  %v2668_v11 = vadd.f32 %v627_v28, %v615_v63  ;;  %v988_v26 = vpop.permute.xlu1 %987  ;;  %v986_v27 = vpop.permute.xlu0 %985  ;;  %v810_v36 = vadd.f32 %v808_v31, %v2623_v41 }
 0x240   : > { %v992_v50 = vsel %vm2533_vm9, %v988_v26, 0.0  ;;  %v991_v37 = vsel %vm264_vm3, %v986_v27, 0.0 }
 0x241   : > { %v996_v58 = vmul.f32 %v994_v22, %v992_v50  ;;  %v995_v20 = vmul.f32 %v994_v22, %v991_v37  ;;  %v631_v43 = vsel %vm435_vm11, %v2668_v11, 0.0  ;;  %v634_v3 = vsel %vm435_vm11, %v2666_v10, 0.0 }
 0x242   : > { %632 = vadd.xlane.f32.xlu0 %v631_v43 }
 0x243   : > { %v815_v0 = vpop.permute.xlu1 %814  ;;  %v813_v59 = vpop.permute.xlu0 %812  ;;  %v998_v5 = vadd.f32 %v996_v58, %v966_v40  ;;  %v997_v35 = vadd.f32 %v995_v20, %v965_v8 }
 0x244   : > { %v819_v7 = vsel %vm2614_vm10, %v815_v0, 0.0  ;;  %v818_v2 = vsel %vm265_vm5, %v813_v59, 0.0 }
 0x245   : > { %v823_v32 = vmul.f32 %v821_v55, %v819_v7  ;;  %v822_v16 = vmul.f32 %v821_v55, %v818_v2  ;;  %v1006_v24 = vadd.f32 %v1004_v6, %v998_v5  ;;  %v1005_v33 = vadd.f32 %v1003_v38, %v997_v35 }
 0x246   : > { %635 = vadd.xlane.f32.xlu0 %v634_v3 }
 0x247   : > { %v2693_v19 = vadd.f32 %v823_v32, %v811_v53  ;;  %v2695_v49 = vadd.f32 %v822_v16, %v810_v36  ;;  %v1010_v1 = vpop.permute.xlu1 %1009  ;;  %v1008_v57 = vpop.permute.xlu0 %1007 }
 0x248   : > { %v1014_v61 = vsel %vm2614_vm10, %v1010_v1, 0.0  ;;  %v1013_v41 = vsel %vm265_vm5, %v1008_v57, 0.0 }
 0x249   : > { %v1018_v13 = vmul.f32 %v1016_v39, %v1014_v61  ;;  %v1017_v56 = vmul.f32 %v1016_v39, %v1013_v41  ;;  %v829_v30 = vsel %vm435_vm11, %v2693_v19, 0.0  ;;  %v826_v60 = vsel %vm435_vm11, %v2695_v49, 0.0 }
 0x24a   : > { %830 = vadd.xlane.f32.xlu0 %v829_v30  ;;  %827 = vadd.xlane.f32.xlu1 %v826_v60 }
 0x24b   : > { %v2705_v23 = vadd.f32 %v1018_v13, %v1006_v24  ;;  %v2707_v46 = vadd.f32 %v1017_v56, %v1005_v33 }
 0x24d   : > { %v1024_v17 = vsel %vm435_vm11, %v2705_v23, 0.0  ;;  %v1021_v62 = vsel %vm435_vm11, %v2707_v46, 0.0 }
 0x24e   : > { %1025 = vadd.xlane.f32.xlu0 %v1024_v17  ;;  %1022 = vadd.xlane.f32.xlu1 %v1021_v62 }
 0x2cb   : > { %v438_v4 = vpop.xlane.xlu0 %437  ;;  %v441_v9 = vpop.xlane.xlu1 %440 }
 0x2cc   : > { %v442_v63 = vadd.f32 %v441_v9, %v438_v4 }
 0x2ce   : > { %v443_v44 = vrot.slane %v442_v63, 4 }
 0x2cf   : > { %v633_v45 = vpop.xlane.xlu0 %632 }
 0x2d0   : > { %v444_v28 = vadd.f32 %v443_v44, %v442_v63 }
 0x2d2   : > { %v445_v15 = vrot.slane %v444_v28, 2 }
 0x2d3   : > { %v636_v14 = vpop.xlane.xlu0 %635 }
 0x2d4   : > { %v446_v54 = vadd.f32 %v445_v15, %v444_v28  ;;  %v637_v34 = vadd.f32 %v636_v14, %v633_v45 }
 0x2d6   : > { %v447_v12 = vrot.slane %v446_v54, 1  ;;  %v638_v22 = vrot.slane %v637_v34, 4 }
 0x2d7   : > { %v831_v51 = vpop.xlane.xlu0 %830  ;;  %v828_v26 = vpop.xlane.xlu1 %827 }
 0x2d8   : > { %v448_v27 = vadd.f32 %v447_v12, %v446_v54  ;;  %v639_v52 = vadd.f32 %v638_v22, %v637_v34  ;;  %v832_v18 = vadd.f32 %v831_v51, %v828_v26 }
 0x2da   : > { %v449_v21 = vmul.f32 0.00390625, %v448_v27  ;;  %v640_v42 = vrot.slane %v639_v52, 2  ;;  %v833_v50 = vrot.slane %v832_v18, 4 }
 0x2db   : > { %v1026_v37 = vpop.xlane.xlu0 %1025  ;;  %v1023_v58 = vpop.xlane.xlu1 %1022 }
 0x2dc   : > { %v641_v20 = vadd.f32 %v640_v42, %v639_v52  ;;  %v834_v43 = vadd.f32 %v833_v50, %v832_v18  ;;  %v1027_v29 = vadd.f32 %v1026_v37, %v1023_v58  ;;  %v2714_v31 = vsub.f32 %v2648_v48, %v449_v21 }
 0x2dd   : > { %v2717_v40 = vsub.f32 %v2646_v47, %v449_v21 }
 0x2de   : > { %v642_v8 = vrot.slane %v641_v20, 1  ;;  %v835_v55 = vrot.slane %v834_v43, 2  ;;  %v1028_v0 = vrot.slane %v1027_v29, 4  ;;  %v453_v53 = vmul.f32 %v2714_v31, %v2714_v31 }
 0x2df   : > { %v452_v59 = vmul.f32 %v2717_v40, %v2717_v40 }
 0x2e0   : > { %v643_v6 = vadd.f32 %v642_v8, %v641_v20  ;;  %v836_v25 = vadd.f32 %v835_v55, %v834_v43  ;;  %v1029_v38 = vadd.f32 %v1028_v0, %v1027_v29  ;;  %v457_v5 = vsel %vm435_vm11, %v453_v53, 0.0 }
 0x2e1   : > { %458 = vadd.xlane.f32.xlu0 %v457_v5  ;;  %v454_v48 = vsel %vm435_vm11, %v452_v59, 0.0 }
 0x2e2   : > { %v644_v35 = vmul.f32 0.00390625, %v643_v6  ;;  %v837_v47 = vrot.slane %v836_v25, 1  ;;  %v1030_v7 = vrot.slane %v1029_v38, 2  ;;  %455 = vadd.xlane.f32.xlu1 %v454_v48 }
 0x2e4   : > { %v838_v2 = vadd.f32 %v837_v47, %v836_v25  ;;  %v1031_v32 = vadd.f32 %v1030_v7, %v1029_v38  ;;  %v2726_v36 = vsub.f32 %v2666_v10, %v644_v35  ;;  %v2729_v16 = vsub.f32 %v2668_v11, %v644_v35 }
 0x2e5   : > { %v1058_v35 = vstv %s2761_s29  ;;  %v1086_v47 = vstv %s2763_s30  ;;  %v1115_v7 = vstv %s2765_s5  ;;  %s2837_s5 = sld [smem:[#allocation9 + $0x2]]  ;;  %s2845_s30 = sld [smem:[#allocation9 + $0x5]] }
 0x2e6   : > { %v839_v3 = vmul.f32 0.00390625, %v838_v2  ;;  %v1032_v39 = vrot.slane %v1031_v32, 1  ;;  %v648_v1 = vmul.f32 %v2726_v36, %v2726_v36  ;;  %v647_v57 = vmul.f32 %v2729_v16, %v2729_v16 }
 0x2e8   : > { %v1033_v24 = vadd.f32 %v1032_v39, %v1031_v32  ;;  %v652_v61 = vsel %vm435_vm11, %v648_v1, 0.0  ;;  %v649_v33 = vsel %vm435_vm11, %v647_v57, 0.0  ;;  %v2738_v41 = vsub.f32 %v2693_v19, %v839_v3 }
 0x2e9   : > { %653 = vadd.xlane.f32.xlu0 %v652_v61  ;;  %650 = vadd.xlane.f32.xlu1 %v649_v33  ;;  %v2741_v10 = vsub.f32 %v2695_v49, %v839_v3  ;;  %v1144_v32 = vstv %s2767_s10  ;;  %v1173_v3 = vstv %s2769_s7  ;;  %v1202_v57 = vstv %s2771_s11  ;;  %s2839_s7 = sld [smem:[#allocation9 + $0x3]]  ;;  %s2843_s10 = sld [smem:[#allocation9 + $0x4]] }
 0x2ea   : > { %v1034_v11 = vmul.f32 0.00390625, %v1033_v24  ;;  %v843_v13 = vmul.f32 %v2738_v41, %v2738_v41  ;;  %v1231_v24 = vstv %s2773_s13  ;;  %v1260_v61 = vstv %s2775_s20  ;;  %s2851_s20 = sld [smem:[#allocation9 + $0x6]] }
 0x2eb   : > { %v842_v56 = vmul.f32 %v2741_v10, %v2741_v10  ;;  %v1062_v33 = vstv %s2777_s23  ;;  %s2853_s23 = sld [smem:[#allocation9 + $0x7]]  ;;  %s3262_s13 = sld [smem:[#allocation42_spill]] }
 0x2ec   : > { %v847_v30 = vsel %vm435_vm11, %v843_v13, 0.0  ;;  %v2749_v60 = vsub.f32 %v2705_v23, %v1034_v11  ;;  %v2752_v19 = vsub.f32 %v2707_v46, %v1034_v11  ;;  %v1090_v11 = vstv %s2779_s21  ;;  %s3261_s21 = sld [smem:[#allocation40_spill]] }
 0x2ed   : > { %848 = vadd.xlane.f32.xlu0 %v847_v30  ;;  %v844_v17 = vsel %vm435_vm11, %v842_v56, 0.0  ;;  %v1119_v30 = vstv %s2781_s26  ;;  %s3263_s26 = sld [smem:[#allocation43_spill]] }
 0x2ee   : > { %845 = vadd.xlane.f32.xlu1 %v844_v17  ;;  %v1038_v49 = vmul.f32 %v2749_v60, %v2749_v60  ;;  %v1037_v62 = vmul.f32 %v2752_v19, %v2752_v19  ;;  %v1148_v17 = vstv %s2783_s6 }
 0x2f0   : > { %v1042_v4 = vsel %vm435_vm11, %v1038_v49, 0.0  ;;  %v1039_v9 = vsel %vm435_vm11, %v1037_v62, 0.0  ;;  %v1177_v49 = vstv %s2785_s8  ;;  %v1206_v62 = vstv %s2787_s9  ;;  %3260 = sst [smem:[#allocation46_spill]] %s2851_s20 }
 0x2f1   : > { %1043 = vadd.xlane.f32.xlu0 %v1042_v4  ;;  %v1235_v4 = vstv %s2789_s28 }
 0x2f2   : > { %1040 = vadd.xlane.f32.xlu1 %v1039_v9  ;;  %v1264_v9 = vstv %s2791_s27 }
 0x36e   : > { %v459_v23 = vpop.xlane.xlu0 %458 }
 0x36f   : > { %v456_v63 = vpop.xlane.xlu1 %455 }
 0x370   : > { %v460_v46 = vadd.f32 %v459_v23, %v456_v63  ;;  %v1068_v23 = vstv %s2793_s0  ;;  %v1096_v63 = vstv %s2795_s1  ;;  %s3273_s0 = sld [smem:[#allocation24_spill]] }
 0x372   : > { %v461_v44 = vrot.slane %v460_v46, 4 }
 0x374   : > { %v462_v45 = vadd.f32 %v461_v44, %v460_v46  ;;  %v1125_v44 = vstv %s2797_s2 }
 0x376   : > { %v463_v28 = vrot.slane %v462_v45, 2  ;;  %v654_v15 = vpop.xlane.xlu0 %653  ;;  %v651_v14 = vpop.xlane.xlu1 %650 }
 0x377   : > { %v655_v54 = vadd.f32 %v654_v15, %v651_v14  ;;  %v1183_v14 = vstv %s2801_s24 }
 0x378   : > { %v464_v34 = vadd.f32 %v463_v28, %v462_v45  ;;  %v1154_v45 = vstv %s2799_s3 }
 0x379   : > { %v656_v12 = vrot.slane %v655_v54, 4 }
 0x37a   : > { %v465_v22 = vrot.slane %v464_v34, 1  ;;  %v849_v51 = vpop.xlane.xlu0 %848 }
 0x37b   : > { %v657_v26 = vadd.f32 %v656_v12, %v655_v54  ;;  %v846_v27 = vpop.xlane.xlu1 %845  ;;  %v1212_v54 = vstv %s2803_s17  ;;  %v1270_v12 = vstv %s2807_s14  ;;  %s3277_s17 = sld [smem:[#allocation44_spill]]  ;;  %s3284_s14 = sld [smem:[#allocation46_spill]] }
 0x37c   : > { %v466_v52 = vadd.f32 %v465_v22, %v464_v34  ;;  %v850_v18 = vadd.f32 %v849_v51, %v846_v27  ;;  %v1241_v34 = vstv %s2805_s16  ;;  %v1074_v22 = vstv %s2809_s18  ;;  %s1420_s16 = sshll.u32 %s3273_s0, 7  ;;  %s3278_s18 = sld [smem:[#allocation45_spill]] }
 0x37d   : > { %v658_v21 = vrot.slane %v657_v26, 2  ;;  %v1102_v51 = vstv %s2811_s22  ;;  %v1160_v27 = vstv %s2815_s25  ;;  %s3014_s22 = scalar_lea.vmem [#allocation10], %s1420_s16 }
 0x37e   : > { %v467_v42 = vmul.f32 0.00390625, %v466_v52  ;;  %v851_v50 = vrot.slane %v850_v18, 4  ;;  %v1044_v37 = vpop.xlane.xlu0 %1043  ;;  %s1302_s24 = sshll.u32 %s3014_s22, 4  ;;  %s3063_s24 = int_to_ptr.vmem [resolvable:$true] %s1302_s24 }
 0x37f   : > { %v659_v58 = vadd.f32 %v658_v21, %v657_v26  ;;  %v1041_v20 = vpop.xlane.xlu1 %1040  ;;  %v1131_v26 = vstv %s3261_s21  ;;  %v1189_v21 = vstv %s3262_s13  ;;  %s1773_s13 = smov [#allocation10]  }
 0x380   : > { %v468_v43 = vadd.f32 1e-05, %v467_v42  ;;  %v852_v29 = vadd.f32 %v851_v50, %v850_v18  ;;  %v1045_v8 = vadd.f32 %v1044_v37, %v1041_v20  ;;  %v1218_v42 = vstv %s3263_s26  ;;  %s1692_s20 = sshll.u32 %s1773_s13, 4  ;;  %s1693_s20 = int_to_ptr.vmem [resolvable:$false] %s1692_s20 }
 0x381   : > { %v660_v55 = vrot.slane %v659_v58, 1  ;;  %v1080_v20 = vstv %s2830_s4  ;;  %s3279_s4 = sld [smem:[#allocation19_spill]]  ;;  %s1694_s21 = scalar_lea.vmem %s1693_s20, 4096 }
 0x382   : > { %v853_v0 = vrot.slane %v852_v29, 2  ;;  %v1046_v53 = vrot.slane %v1045_v8, 4  ;;  %1605 = vrsqrt.f32 %v468_v43  ;;  %v1108_v43 = vstv %s2832_s19  ;;  %p1695_p2 = scmp.lt.s32.totalorder %s3063_s24, %s1693_s20 }
 0x383   : > { %v661_v59 = vadd.f32 %v660_v55, %v659_v58 }
 0x384   : > { %v854_v6 = vadd.f32 %v853_v0, %v852_v29  ;;  %v1047_v25 = vadd.f32 %v1046_v53, %v1045_v8  ;;  %v1137_v29 = vstv %s2837_s5  ;;  %s3289_s5 = sld [smem:[#allocation51_spill]] }
 0x385   : > { %v662_v38 = vmul.f32 0.00390625, %v661_v59 }
 0x386   : > { %v855_v5 = vrot.slane %v854_v6, 1  ;;  %v1048_v48 = vrot.slane %v1047_v25, 2 }
 0x387   : > { %v663_v2 = vadd.f32 1e-05, %v662_v38  ;;  %s1520_s19 = sshll.u32 %s3279_s4, 11 }
 0x388   : > { %v856_v39 = vadd.f32 %v855_v5, %v854_v6  ;;  %v1049_v1 = vadd.f32 %v1048_v48, %v1047_v25 }
 0x389   : > { %1607 = vrsqrt.f32 %v663_v2 }
 0x38a   : > { %v857_v13 = vmul.f32 0.00390625, %v856_v39  ;;  %v1050_v56 = vrot.slane %v1049_v1, 1 }
 0x38c   : > { %v1606_v46 = vpop.eup %1605  ;;  %v858_v28 = vadd.f32 1e-05, %v857_v13  ;;  %v1051_v15 = vadd.f32 %v1050_v56, %v1049_v1 }
 0x38d   : > { %v470_v52 = vmul.f32 %v1606_v46, %v2717_v40  ;;  %v471_v18 = vmul.f32 %v1606_v46, %v2714_v31  ;;  %v1166_v40 = vstv %s2839_s7  ;;  %s3061_s7 = scalar_lea.hbm %s3289_s5, %s1520_s19 }
 0x38e   : > { %1609 = vrsqrt.f32 %v858_v28  ;;  %v1052_v58 = vmul.f32 0.00390625, %v1051_v15 }
 0x38f   : > { %v1059_v59 = vmul.f32 %v1058_v35, %v470_v52  ;;  %v1060_v6 = vmul.f32 %v1058_v35, %v471_v18  ;;  %v1087_v5 = vmul.f32 %v1086_v47, %v470_v52  ;;  %v1088_v48 = vmul.f32 %v1086_v47, %v471_v18 }
 0x390   : > { %v1116_v2 = vmul.f32 %v1115_v7, %v470_v52  ;;  %v1053_v39 = vadd.f32 1e-05, %v1052_v58  ;;  %v1117_v1 = vmul.f32 %v1115_v7, %v471_v18  ;;  %v1145_v35 = vmul.f32 %v1144_v32, %v470_v52 }
 0x391   : > { %v1175_v13 = vmul.f32 %v1173_v3, %v471_v18  ;;  %v1203_v47 = vmul.f32 %v1202_v57, %v470_v52  ;;  %v1204_v28 = vmul.f32 %v1202_v57, %v471_v18  ;;  %v1232_v7 = vmul.f32 %v1231_v24, %v470_v52 }
 0x392   : > { %v1233_v58 = vmul.f32 %v1231_v24, %v471_v18  ;;  %1611 = vrsqrt.f32 %v1053_v39 }
 0x393   : > { %v1608_v8 = vpop.eup %1607 }
 0x394   : > { %v665_v25 = vmul.f32 %v1608_v8, %v2729_v16  ;;  %v666_v38 = vmul.f32 %v1608_v8, %v2726_v36  ;;  %v1146_v16 = vmul.f32 %v1144_v32, %v471_v18  ;;  %v1174_v36 = vmul.f32 %v1173_v3, %v470_v52 }
 0x395   : > { %v1261_v3 = vmul.f32 %v1260_v61, %v470_v52  ;;  %v1262_v8 = vmul.f32 %v1260_v61, %v471_v18 }
 0x396   : > { %v1063_v56 = vmul.f32 %v1062_v33, %v665_v25  ;;  %v1064_v46 = vmul.f32 %v1062_v33, %v666_v38  ;;  %v1091_v15 = vmul.f32 %v1090_v11, %v665_v25  ;;  %v1092_v32 = vmul.f32 %v1090_v11, %v666_v38 }
 0x397   : > { %v1120_v57 = vmul.f32 %v1119_v30, %v665_v25  ;;  %v1121_v33 = vmul.f32 %v1119_v30, %v666_v38  ;;  %v1149_v53 = vmul.f32 %v1148_v17, %v665_v25  ;;  %v1150_v11 = vmul.f32 %v1148_v17, %v666_v38 }
 0x398   : > { %v1610_v0 = vpop.eup %1609  ;;  %v1065_v24 = vadd.f32 %v1063_v56, %v1059_v59  ;;  %v1066_v55 = vadd.f32 %v1064_v46, %v1060_v6  ;;  %v1178_v52 = vmul.f32 %v1177_v49, %v665_v25  ;;  %v1179_v31 = vmul.f32 %v1177_v49, %v666_v38 }
 0x399   : > { %v1093_v61 = vadd.f32 %v1091_v15, %v1087_v5  ;;  %v1094_v18 = vadd.f32 %v1092_v32, %v1088_v48  ;;  %v1207_v39 = vmul.f32 %v1206_v62, %v665_v25  ;;  %v1208_v37 = vmul.f32 %v1206_v62, %v666_v38 }
 0x39a   : > { %v1236_v30 = vmul.f32 %v1235_v4, %v665_v25  ;;  %v1237_v50 = vmul.f32 %v1235_v4, %v666_v38  ;;  %v1265_v17 = vmul.f32 %v1264_v9, %v665_v25  ;;  %v1266_v59 = vmul.f32 %v1264_v9, %v666_v38 }
 0x39b   : > { %v1122_v6 = vadd.f32 %v1120_v57, %v1116_v2  ;;  %v1123_v56 = vadd.f32 %v1121_v33, %v1117_v1  ;;  %v860_v49 = vmul.f32 %v1610_v0, %v2741_v10  ;;  %v861_v5 = vmul.f32 %v1610_v0, %v2738_v41 }
 0x39c   : > { %v1151_v62 = vadd.f32 %v1149_v53, %v1145_v35  ;;  %v1152_v48 = vadd.f32 %v1150_v11, %v1146_v16  ;;  %v1180_v46 = vadd.f32 %v1178_v52, %v1174_v36  ;;  %v1181_v15 = vadd.f32 %v1179_v31, %v1175_v13  ;;  %v1612_v35 = vpop.eup %1611 }
 0x39d   : > { %v1209_v4 = vadd.f32 %v1207_v39, %v1203_v47  ;;  %v1210_v25 = vadd.f32 %v1208_v37, %v1204_v28  ;;  %v1069_v9 = vmul.f32 %v1068_v23, %v860_v49  ;;  %v1070_v38 = vmul.f32 %v1068_v23, %v861_v5 }
 0x39e   : > { %v1238_v10 = vadd.f32 %v1236_v30, %v1232_v7  ;;  %v1239_v2 = vadd.f32 %v1237_v50, %v1233_v58  ;;  %v1267_v41 = vadd.f32 %v1265_v17, %v1261_v3  ;;  %v1268_v0 = vadd.f32 %v1266_v59, %v1262_v8 }
 0x39f   : > { %v1097_v31 = vmul.f32 %v1096_v63, %v860_v49  ;;  %v1098_v37 = vmul.f32 %v1096_v63, %v861_v5  ;;  %v1126_v53 = vmul.f32 %v1125_v44, %v860_v49  ;;  %v1127_v1 = vmul.f32 %v1125_v44, %v861_v5 }
 0x3a0   : > { %v1071_v23 = vadd.f32 %v1069_v9, %v1065_v24  ;;  %v1072_v16 = vadd.f32 %v1070_v38, %v1066_v55  ;;  %v1155_v36 = vmul.f32 %v1154_v45, %v860_v49  ;;  %v1156_v50 = vmul.f32 %v1154_v45, %v861_v5 }
 0x3a1   : > { %v1184_v13 = vmul.f32 %v1183_v14, %v860_v49  ;;  %v1185_v47 = vmul.f32 %v1183_v14, %v861_v5  ;;  %v1213_v28 = vmul.f32 %v1212_v54, %v860_v49  ;;  %v1214_v7 = vmul.f32 %v1212_v54, %v861_v5 }
 0x3a2   : > { %v1242_v63 = vmul.f32 %v1241_v34, %v860_v49  ;;  %v1243_v32 = vmul.f32 %v1241_v34, %v861_v5  ;;  %v1271_v44 = vmul.f32 %v1270_v12, %v860_v49  ;;  %v1272_v55 = vmul.f32 %v1270_v12, %v861_v5 }
 0x3a3   : > { %v1099_v58 = vadd.f32 %v1097_v31, %v1093_v61  ;;  %v1100_v3 = vadd.f32 %v1098_v37, %v1094_v18  ;;  %v1128_v45 = vadd.f32 %v1126_v53, %v1122_v6  ;;  %v1129_v8 = vadd.f32 %v1127_v1, %v1123_v56 }
 0x3a4   : > { %v1157_v14 = vadd.f32 %v1155_v36, %v1151_v62  ;;  %v1158_v57 = vadd.f32 %v1156_v50, %v1152_v48  ;;  %v1186_v54 = vadd.f32 %v1184_v13, %v1180_v46  ;;  %v1187_v33 = vadd.f32 %v1185_v47, %v1181_v15 }
 0x3a5   : > { %v1215_v34 = vadd.f32 %v1213_v28, %v1209_v4  ;;  %v1216_v11 = vadd.f32 %v1214_v7, %v1210_v25  ;;  %v1055_v12 = vmul.f32 %v1612_v35, %v2752_v19  ;;  %v1056_v24 = vmul.f32 %v1612_v35, %v2749_v60 }
 0x3a6   : > { %v1244_v52 = vadd.f32 %v1242_v63, %v1238_v10  ;;  %v1245_v61 = vadd.f32 %v1243_v32, %v1239_v2  ;;  %v1273_v18 = vadd.f32 %v1271_v44, %v1267_v41  ;;  %v1274_v39 = vadd.f32 %v1272_v55, %v1268_v0 }
 0x3a7   : > { %v1075_v30 = vmul.f32 %v1074_v22, %v1055_v12  ;;  %v1076_v17 = vmul.f32 %v1074_v22, %v1056_v24  ;;  %v1103_v59 = vmul.f32 %v1102_v51, %v1055_v12  ;;  %v1104_v6 = vmul.f32 %v1102_v51, %v1056_v24 }
 0x3a8   : > { %v1132_v19 = vmul.f32 %v1131_v26, %v1055_v12  ;;  %v1133_v60 = vmul.f32 %v1131_v26, %v1056_v24  ;;  %v1161_v56 = vmul.f32 %v1160_v27, %v1055_v12  ;;  %v1162_v49 = vmul.f32 %v1160_v27, %v1056_v24 }
 0x3a9   : > { %v1077_v22 = vadd.f32 %v1075_v30, %v1071_v23  ;;  %v1078_v5 = vadd.f32 %v1076_v17, %v1072_v16  ;;  %v1105_v62 = vadd.f32 %v1103_v59, %v1099_v58  ;;  %v1106_v48 = vadd.f32 %v1104_v6, %v1100_v3 }
 0x3aa   : > { %v1134_v46 = vadd.f32 %v1132_v19, %v1128_v45  ;;  %v1135_v15 = vadd.f32 %v1133_v60, %v1129_v8  ;;  %v1163_v51 = vadd.f32 %v1161_v56, %v1157_v14  ;;  %v1164_v4 = vadd.f32 %v1162_v49, %v1158_v57 }
 0x3ab   : > { %v1081_v26 = vadd.f32 %v1080_v20, %v1077_v22  ;;  %v1082_v25 = vadd.f32 %v1080_v20, %v1078_v5  ;;  %v1109_v9 = vadd.f32 %v1108_v43, %v1105_v62  ;;  %v1110_v27 = vadd.f32 %v1108_v43, %v1106_v48 }
 0x3ac   : > { %v1138_v38 = vadd.f32 %v1137_v29, %v1134_v46  ;;  %v1139_v10 = vadd.f32 %v1137_v29, %v1135_v15  ;;  %v1167_v2 = vadd.f32 %v1166_v40, %v1163_v51  ;;  %v1168_v41 = vadd.f32 %v1166_v40, %v1164_v4 }
 0x3ad   : > { %1083 = vst.msk [vmem:[%s3014_s22] sm:$0xff] %vm435_vm11, %v1081_v26  ;;  %1084 = vst.msk [vmem:[%s3014_s22 + $0x8] sm:$0xff] %vm435_vm11, %v1082_v25  ;;  %v1190_v20 = vmul.f32 %v1189_v21, %v1055_v12  ;;  %v1191_v43 = vmul.f32 %v1189_v21, %v1056_v24  ;;  %v1219_v29 = vmul.f32 %v1218_v42, %v1055_v12  ;;  %v3280_v0 = vstv %s3277_s17 }
 0x3ae   : > { %1470 = vst.msk [vmem:[%s3014_s22 + $0x10] sm:$0xff] %vm435_vm11, %v1109_v9  ;;  %1471 = vst.msk [vmem:[%s3014_s22 + $0x18] sm:$0xff] %vm435_vm11, %v1110_v27  ;;  %v1220_v40 = vmul.f32 %v1218_v42, %v1056_v24  ;;  %v1248_v31 = vmul.f32 %v3280_v0, %v1055_v12  ;;  %v3281_v37 = vmov %v3280_v0  ;;  %v3282_v21 = vstv %s3278_s18 }
 0x3af   : > { %1477 = vst.msk [vmem:[%s3014_s22 + $0x20] sm:$0xff] %vm435_vm11, %v1138_v38  ;;  %1478 = vst.msk [vmem:[%s3014_s22 + $0x28] sm:$0xff] %vm435_vm11, %v1139_v10  ;;  %v1249_v53 = vmul.f32 %v3281_v37, %v1056_v24  ;;  %v1277_v1 = vmul.f32 %v3282_v21, %v1055_v12  ;;  %v3283_v35 = vmov %v3282_v21  ;;  %v1192_v23 = vadd.f32 %v1190_v20, %v1186_v54 }
 0x3b0   : > { %1484 = vst.msk [vmem:[%s3014_s22 + $0x30] sm:$0xff] %vm435_vm11, %v1167_v2  ;;  %1485 = vst.msk [vmem:[%s3014_s22 + $0x38] sm:$0xff] %vm435_vm11, %v1168_v41  ;;  %v1278_v42 = vmul.f32 %v3283_v35, %v1056_v24  ;;  %v1193_v16 = vadd.f32 %v1191_v43, %v1187_v33  ;;  %v1221_v36 = vadd.f32 %v1219_v29, %v1215_v34  ;;  %v3285_v63 = vstv %s2843_s10  ;;  %s1688_s10 = scalar_lea.vmem %s3063_s24, 2048 }
 0x3b1   : > { %v1222_v50 = vadd.f32 %v1220_v40, %v1216_v11  ;;  %v1250_v13 = vadd.f32 %v1248_v31, %v1244_v52  ;;  %v1251_v47 = vadd.f32 %v1249_v53, %v1245_v61  ;;  %v1279_v28 = vadd.f32 %v1277_v1, %v1273_v18  ;;  %p1689_p12 = scmp.ne.s32.totalorder %s3063_s24, %s1688_s10  ;;  %p1696_p4 = scmp.lt.s32.totalorder %s1694_s21, %s1688_s10 }
 0x3b2   : > { %v1280_v7 = vadd.f32 %v1278_v42, %v1274_v39  ;;  %v1196_v32 = vadd.f32 %v3285_v63, %v1192_v23  ;;  %v3286_v44 = vmov %v3285_v63  ;;  %v3287_v58 = vstv %s2845_s30  ;;  %s1289_s30 = scalar_lea.sflag [#allocation4], %s3273_s0 }
 0x3b3   : > { %v1197_v55 = vadd.f32 %v3286_v44, %v1193_v16  ;;  %v1225_v3 = vadd.f32 %v3287_v58, %v1221_v36  ;;  %v3288_v45 = vmov %v3287_v58  ;;  %v3290_v14 = vstv %s3284_s14  ;;  %p1690_p0 = pnand %p1689_p12, %p1902_p9  ;;  %p1697_p6 = por %p1696_p4, %p1695_p2 }
 0x3b4   : > { %v1226_v8 = vadd.f32 %v3288_v45, %v1222_v50  ;;  %v1254_v57 = vadd.f32 %v3290_v14, %v1250_v13  ;;  %v3292_v54 = vmov %v3290_v14  ;;  %v3293_v34 = vstv %s2853_s23  ;;  %1491 = vst.msk [vmem:[%s3014_s22 + $0x40] sm:$0xff] %vm435_vm11, %v1196_v32 }
 0x3b5   : > { %v1255_v33 = vadd.f32 %v3292_v54, %v1251_v47  ;;  %v1283_v11 = vadd.f32 %v3293_v34, %v1279_v28  ;;  %v3294_v12 = vmov %v3293_v34  ;;  %1492 = vst.msk [vmem:[%s3014_s22 + $0x48] sm:$0xff] %vm435_vm11, %v1197_v55  ;;  %1498 = vst.msk [vmem:[%s3014_s22 + $0x50] sm:$0xff] %vm435_vm11, %v1225_v3  ;;  %p1691_p3 = pneg %p1690_p0 }
 0x3b6   : > { %v1284_v24 = vadd.f32 %v3294_v12, %v1280_v7  ;;  %1499 = vst.msk [vmem:[%s3014_s22 + $0x58] sm:$0xff] %vm435_vm11, %v1226_v8  ;;  %1505 = vst.msk [vmem:[%s3014_s22 + $0x60] sm:$0xff] %vm435_vm11, %v1254_v57 }
 0x3b7   : > { %1506 = vst.msk [vmem:[%s3014_s22 + $0x68] sm:$0xff] %vm435_vm11, %v1255_v33  ;;  %1512 = vst.msk [vmem:[%s3014_s22 + $0x70] sm:$0xff] %vm435_vm11, %v1283_v11  ;;  %p1698_p8 = pnand %p1697_p6, %p1691_p3 }
 0x3b8   : > { %1513 = vst.msk [vmem:[%s3014_s22 + $0x78] sm:$0xff] %vm435_vm11, %v1284_v24 }
 0x3b9   : > { %1701 = shalt.err (!%p1698_p8)
}
 0x3ba   : > { %s1702_s26 = scalar_lea.hbm %s3061_s7, 2048  ;;  %s1706_s9 = scalar_lea.hbm %s3289_s5, 4096 }
 0x3bb   : > { %p1703_p1 = scmp.ne.s32.totalorder %s3061_s7, %s1702_s26  ;;  %p1707_p13 = scmp.lt.u32.totalorder %s3061_s7, %s3289_s5 }
 0x3bc   : > { %p1708_p7 = scmp.lt.u32.totalorder %s1706_s9, %s1702_s26  ;;  %p1710_p12 = scmp.lt.u32.totalorder %s1702_s26, %s3061_s7 }
 0x3bd   : > { %p1704_p5 = pnand %p1703_p1, %p1902_p9 }
 0x3be   : > { %p1709_p10 = por %p1708_p7, %p1707_p13 }
 0x3bf   : > { %p1705_p11 = pneg %p1704_p5 }
 0x3c0   : > { %p1711_p0 = por %p1710_p12, %p1709_p10 }
 0x3c2   : > { %p1712_p3 = pnand %p1711_p0, %p1705_p11 }
 0x3c4   : > { %1715 = shalt.err (!%p1712_p3)
}
 0x3c5   : > { %s1774_s23 = smov 128   ;;  %s1775_s29 = smov 8  }
 0x3c6   : > { %1535 = dma.vmem_to_hbm [thread:$0]  (%p1902_p9), %s3063_s24, 2048, %s3061_s7, %s1289_s30, %s1774_s23, %s1774_s23, %s1775_s29  }
 0x3c7 PF: > { %s3295_s15 = sld [smem:[#allocation15_spill]]  ;;  %s3296_s1 = sld [smem:[#allocation20_spill]] }
 0x3c8   : > { %s3297_s2 = sld [smem:[#allocation18_spill]] }
 0x3cd   : > { %s1317_s3 = sand.u32 1, %s3295_s15   ;;  %p3298_p2 = scmp.ne.s32.totalorder %s3296_s1, 0 }
 0x3ce   : > { %p3299_p4 = scmp.ge.s32.totalorder %s3297_s2, 2  ;;  %s1318_s16 = scalar_lea.sflag [#allocation4], %s1317_s3 }
 0x3d0   : > { %p1552_p6 = pnand %p3299_p4, %p3298_p2 }
 0x3d2   : > { %1745 = dma.done.wait (!%p1552_p6), %s1318_s16, 2048  }
 0x3d3   : > { %1747 = vsyncadd (!%p1552_p6), %s1318_s16, 4294965248  ;;  %s3300_s18 = sld [smem:[#allocation21_spill]]  ;;  %s3301_s15 = sld [smem:[#allocation16_spill]] }
 0x3d4   : > { %s3302_s16 = sld [smem:[#allocation17_spill]]  ;;  %s3303_s17 = sld [smem:[#allocation22_spill]] }
 0x3d9   : > { %p19_p8 = scmp.ge.s32.totalorder %s3300_s18, 4  }
 0x3db   :  { %21 = sbr.rel (!%p19_p8) target bundleno = 13 (0xd), region = 104 }
 0x3e2   :  { %1323 = vsyncpa [#allocation3], 1 }
 0x3e3   :  { %1325 = vsyncpa [#allocation3 + $0x1], 1 }
 0x3e4   :  { %1326 = vsyncpa [#allocation4], 1 }
 0x3e5   :  { %1328 = vsyncpa [#allocation4 + $0x1], 1 }
 0x3e6   :  { %1329 = vsyncpa [#allocation5], 1 }
 0x3e7   :  { %1331 = vsyncpa [#allocation5 + $0x1], 1 }
 0x3e8   :  { %1332 = vsyncpa [#allocation8], 1 }

</bundles_post_ra>
